<compile_context>
chip_gen: v7x
topology: tpu7x:2x2x1
jax: 0.10.0
libtpu: 0.0.40
codegen_flags: <defaults>
</compile_context>

<pallas_src>
import functools

import jax
import jax.numpy as jnp
from jax.experimental import pallas as pl
from jax.experimental.pallas import tpu as pltpu

ACT_DTYPE = jnp.bfloat16                    # activation / weight storage dtype
_VMEM_LIMIT = 32 * 1024 * 1024              # safe across v5e / v6e / v7x


def _choose_tile(dim, preferred, align):
    """Largest tile <= preferred that divides dim and is `align`-aligned."""
    if dim <= preferred:
        return dim
    t = (preferred // align) * align
    while t >= align:
        if dim % t == 0:
            return t
        t -= align
    return dim


# ----------------------------------------------------------------------------
# Linear: y = act(x @ w + b), tiled over (M, N, K) with f32 accumulator
# ----------------------------------------------------------------------------
def _linear_kernel(x_ref, w_ref, b_ref, o_ref, acc_ref, *, activation):
    @pl.when(pl.program_id(2) == 0)
    def _():
        acc_ref[...] = jnp.zeros_like(acc_ref)

    acc_ref[...] += jnp.dot(x_ref[...], w_ref[...],
                            preferred_element_type=jnp.float32)

    @pl.when(pl.program_id(2) == pl.num_programs(2) - 1)
    def _():
        y = acc_ref[...] + b_ref[...].astype(jnp.float32)
        if activation == "gelu":
            y = jax.nn.gelu(y, approximate=True)
        elif activation == "tanh":
            y = jnp.tanh(y)
        elif activation == "sigmoid":
            y = jax.nn.sigmoid(y)
        o_ref[...] = y.astype(o_ref.dtype)


def pallas_linear(x, w, b, activation="none", out_dtype=None):
    M, K = x.shape
    K2, N = w.shape
    assert K == K2
    out_dtype = out_dtype or x.dtype
    b2 = b.reshape(1, N).astype(jnp.float32)

    tm = _choose_tile(M, 256, 8)      # large MXU-friendly row tile
    tn = _choose_tile(N, 256, 128)    # lane-dense output tile
    tk = _choose_tile(K, 512, 128)    # reduction tile
    grid = (M // tm, N // tn, K // tk)

    bytes_accessed = int(x.size * x.dtype.itemsize + w.size * w.dtype.itemsize
                         + b2.size * 4 + M * N * jnp.dtype(out_dtype).itemsize)

    return pl.pallas_call(
        functools.partial(_linear_kernel, activation=activation),
        grid=grid,
        in_specs=[
            pl.BlockSpec((tm, tk), lambda i, j, k: (i, k)),
            pl.BlockSpec((tk, tn), lambda i, j, k: (k, j)),
            pl.BlockSpec((1, tn), lambda i, j, k: (0, j)),
        ],
        out_specs=pl.BlockSpec((tm, tn), lambda i, j, k: (i, j)),
        out_shape=jax.ShapeDtypeStruct((M, N), out_dtype),
        scratch_shapes=[pltpu.VMEM((tm, tn), jnp.float32)],
        compiler_params=pltpu.CompilerParams(
            dimension_semantics=("parallel", "parallel", "arbitrary"),
            vmem_limit_bytes=_VMEM_LIMIT),
        cost_estimate=pl.CostEstimate(flops=2 * M * N * K, transcendentals=0,
                                      bytes_accessed=bytes_accessed),
    )(x, w, b2)


# ----------------------------------------------------------------------------
# LayerNorm with optional fused residual add (f32 math)
# ----------------------------------------------------------------------------
def _layernorm_kernel(*refs, eps, residual):
    if residual:
        x_ref, r_ref, g_ref, b_ref, o_ref = refs
        x = x_ref[...].astype(jnp.float32) + r_ref[...].astype(jnp.float32)
    else:
        x_ref, g_ref, b_ref, o_ref = refs
        x = x_ref[...].astype(jnp.float32)
    mean = jnp.mean(x, axis=-1, keepdims=True)
    var = jnp.mean(jnp.square(x - mean), axis=-1, keepdims=True)
    y = (x - mean) * jax.lax.rsqrt(var + eps)
    o_ref[...] = (y * g_ref[...] + b_ref[...]).astype(o_ref.dtype)


def pallas_layernorm(x, gamma, beta, residual=None, eps=1e-12, out_dtype=None):
    M, H = x.shape
    out_dtype = out_dtype or x.dtype
    g2 = gamma.reshape(1, H).astype(jnp.float32)
    b2 = beta.reshape(1, H).astype(jnp.float32)

    tm = _choose_tile(M, 512, 8)
    grid = (M // tm,)
    row_spec = pl.BlockSpec((tm, H), lambda i: (i, 0))
    vec_spec = pl.BlockSpec((1, H), lambda i: (0, 0))

    if residual is not None:
        in_specs = [row_spec, row_spec, vec_spec, vec_spec]
        args = (x, residual, g2, b2)
    else:
        in_specs = [row_spec, vec_spec, vec_spec]
        args = (x, g2, b2)

    return pl.pallas_call(
        functools.partial(_layernorm_kernel, eps=eps,
                          residual=residual is not None),
        grid=grid,
        in_specs=in_specs,
        out_specs=row_spec,
        out_shape=jax.ShapeDtypeStruct((M, H), out_dtype),
        compiler_params=pltpu.CompilerParams(
            dimension_semantics=("parallel",),
            vmem_limit_bytes=_VMEM_LIMIT),
    )(*args)


# ----------------------------------------------------------------------------
# Multi-head self-attention on fused QKV, lane-dense (1, S, 3H) -> (1, S, H)
# ----------------------------------------------------------------------------
def _attention_kernel(qkv_ref, bias_ref, o_ref, *, n_heads, head_dim, scale):
    H = n_heads * head_dim
    qkv = qkv_ref[0].astype(jnp.float32)        # (S, 3H)
    bias = bias_ref[0]                           # (1, S) additive mask bias
    outs = []
    for h in range(n_heads):                     # static unroll over heads
        lo = h * head_dim
        qh = qkv[:, lo:lo + head_dim]
        kh = qkv[:, H + lo:H + lo + head_dim]
        vh = qkv[:, 2 * H + lo:2 * H + lo + head_dim]
        s = jnp.dot(qh, kh.T, preferred_element_type=jnp.float32) * scale + bias
        s = s - jnp.max(s, axis=-1, keepdims=True)
        p = jnp.exp(s)
        p = p * pl.reciprocal(jnp.sum(p, axis=-1, keepdims=True), approx=True)
        outs.append(jnp.dot(p, vh, preferred_element_type=jnp.float32))
    ctx = jnp.concatenate(outs, axis=-1)         # (S, H) — dense lane store
    o_ref[...] = ctx[None].astype(o_ref.dtype)


def pallas_attention(qkv, attn_bias, n_heads):
    B, S, H3 = qkv.shape
    H = H3 // 3
    head_dim = H // n_heads
    scale = 1.0 / float(head_dim) ** 0.5
    return pl.pallas_call(
        functools.partial(_attention_kernel, n_heads=n_heads,
                          head_dim=head_dim, scale=scale),
        grid=(B,),
        in_specs=[
            pl.BlockSpec((1, S, H3), lambda b: (b, 0, 0)),
            pl.BlockSpec((1, 1, S), lambda b: (b, 0, 0)),
        ],
        out_specs=pl.BlockSpec((1, S, H), lambda b: (b, 0, 0)),
        out_shape=jax.ShapeDtypeStruct((B, S, H), qkv.dtype),
        compiler_params=pltpu.CompilerParams(
            dimension_semantics=("parallel",),
            vmem_limit_bytes=_VMEM_LIMIT),
    )(qkv, attn_bias)


# ----------------------------------------------------------------------------
# Deterministic parameter init (synthetic mini-BERT, bf16 matmul weights)
# ----------------------------------------------------------------------------
def init_params(key, *, vocab, type_vocab, max_pos, hidden, n_layers,
                intermediate, max_seq_len):
    std = 0.02
    keys = iter(jax.random.split(key, 8 + 8 * n_layers))

    def nrm(shape, dtype=ACT_DTYPE):
        return (jax.random.normal(next(keys), shape, jnp.float32) * std).astype(dtype)

    params = {
        "word_emb": nrm((vocab, hidden), jnp.float32),
        "pos_emb": nrm((max_pos, hidden), jnp.float32),
        "type_emb": nrm((type_vocab, hidden), jnp.float32),
        "emb_ln_g": jnp.ones((hidden,), jnp.float32),
        "emb_ln_b": jnp.zeros((hidden,), jnp.float32),
        "layers": [],
    }
    for _ in range(n_layers):
        params["layers"].append({
            "wqkv": nrm((hidden, 3 * hidden)),                 # fused Q|K|V
            "bqkv": jnp.zeros((3 * hidden,), jnp.float32),
            "wo": nrm((hidden, hidden)),
            "bo": jnp.zeros((hidden,), jnp.float32),
            "ln1_g": jnp.ones((hidden,), jnp.float32),
            "ln1_b": jnp.zeros((hidden,), jnp.float32),
            "w1": nrm((hidden, intermediate)),
            "b1": jnp.zeros((intermediate,), jnp.float32),
            "w2": nrm((intermediate, hidden)),
            "b2": jnp.zeros((hidden,), jnp.float32),
            "ln2_g": jnp.ones((hidden,), jnp.float32),
            "ln2_b": jnp.zeros((hidden,), jnp.float32),
        })
    params["pool_w"] = nrm((hidden, hidden))
    params["pool_b"] = jnp.zeros((hidden,), jnp.float32)
    params["se_w"] = nrm((hidden, 2 * max_seq_len))            # fused start|end
    params["se_b"] = jnp.zeros((2 * max_seq_len,), jnp.float32)
    return params


# ----------------------------------------------------------------------------
# Forward pass (mirrors BertBase.forward)
# ----------------------------------------------------------------------------
def bert_base_forward(params, input_ids, segment_ids, mask, *, n_heads,
                      max_seq_len):
    B, S = input_ids.shape
    H = params["word_emb"].shape[1]

    # --- BERT embeddings (gathers are glue JAX) ---
    pos_ids = jnp.arange(S)
    emb = (params["word_emb"][input_ids]
           + params["pos_emb"][pos_ids][None, :, :]
           + params["type_emb"][segment_ids])                  # (B, S, H) f32
    x2 = pallas_layernorm(emb.reshape(B * S, H),
                          params["emb_ln_g"], params["emb_ln_b"],
                          out_dtype=ACT_DTYPE)                 # (B*S, H) bf16

    # additive attention bias: 0 where keep, -1e9 where padded
    attn_bias = ((mask.astype(jnp.float32) - 1.0) * 1e9).reshape(B, 1, S)

    # --- Transformer encoder layers ---
    for layer in params["layers"]:
        qkv = pallas_linear(x2, layer["wqkv"], layer["bqkv"])       # (B*S, 3H)
        ctx = pallas_attention(qkv.reshape(B, S, 3 * H), attn_bias, n_heads)
        attn_out = pallas_linear(ctx.reshape(B * S, H),
                                 layer["wo"], layer["bo"])
        x2 = pallas_layernorm(attn_out, layer["ln1_g"], layer["ln1_b"],
                              residual=x2)                          # fused add+LN

        ff = pallas_linear(x2, layer["w1"], layer["b1"], activation="gelu")
        ff = pallas_linear(ff, layer["w2"], layer["b2"])
        x2 = pallas_layernorm(ff, layer["ln2_g"], layer["ln2_b"],
                              residual=x2)                          # fused add+LN

    # --- BERT pooler: tanh(W * h_[CLS] + b) ---
    seq_out = x2.reshape(B, S, H)
    cls = seq_out[:, 0, :]                                          # (B, H)
    pooled = pallas_linear(cls, params["pool_w"], params["pool_b"],
                           activation="tanh")

    # TODO(synk): nn.Dropout(0.25) is identity in eval mode; training-mode
    # stochastic masking (pltpu.prng_*) intentionally omitted.
    bert_out = pooled

    # --- fused start|end head + sigmoid ---
    se = pallas_linear(bert_out, params["se_w"], params["se_b"],
                       activation="sigmoid", out_dtype=jnp.float32)
    start = se[:, :max_seq_len]
    end = se[:, max_seq_len:]
    return start, end


# ----------------------------------------------------------------------------
if __name__ == "__main__":
    B, S = 2, 8
    HIDDEN, N_HEADS, N_LAYERS, INTER = 32, 2, 2, 64
    VOCAB, TYPE_VOCAB, MAX_POS, MAX_SEQ_LEN = 64, 2, 16, 8

    key = jax.random.PRNGKey(0)
    kp, kid, kseg = jax.random.split(key, 3)

    params = init_params(kp, vocab=VOCAB, type_vocab=TYPE_VOCAB, max_pos=MAX_POS,
                         hidden=HIDDEN, n_layers=N_LAYERS,
                         intermediate=INTER, max_seq_len=MAX_SEQ_LEN)

    input_ids = jax.random.randint(kid, (B, S), 0, VOCAB, dtype=jnp.int32)
    segment_ids = jax.random.randint(kseg, (B, S), 0, TYPE_VOCAB, dtype=jnp.int32)
    # attention mask: last two tokens of batch item 1 are padding
    mask = jnp.ones((B, S), jnp.int32).at[1, -2:].set(0)

    fwd = jax.jit(functools.partial(bert_base_forward, n_heads=N_HEADS,
                                    max_seq_len=MAX_SEQ_LEN))
    start, end = fwd(params, input_ids, segment_ids, mask)
    start = jax.block_until_ready(start)
    end = jax.block_until_ready(end)

    assert start.shape == (B, MAX_SEQ_LEN) and end.shape == (B, MAX_SEQ_LEN)
    assert bool(jnp.all(jnp.isfinite(start))) and bool(jnp.all(jnp.isfinite(end)))
    assert bool(jnp.all((start >= 0) & (start <= 1)))
    assert bool(jnp.all((end >= 0) & (end <= 1)))
    print("KERNEL_OK")
</pallas_src>

<mosaic_0001>
module attributes {stable_mosaic.version = 11 : i64} {
  func.func @_attention_kernel(%arg0: i32, %arg1: memref<1x8x96xbf16, #tpu.memory_space<vmem>>, %arg2: memref<1x1x8xf32, #tpu.memory_space<vmem>>, %arg3: memref<1x8x32xbf16, #tpu.memory_space<vmem>>) attributes {dimension_semantics = [#tpu.dimension_semantics<parallel>], iteration_bounds = array<i64: 2>, scalar_prefetch = 0 : i64, scratch_operands = 0 : i64, tpu.core_type = #tpu.core_type<tc>, window_params = [{transform_indices = @transform_0, window_bounds = array<i64: 1, 8, 96>}, {transform_indices = @transform_1, window_bounds = array<i64: 1, 1, 8>}, {transform_indices = @transform_2, window_bounds = array<i64: 1, 8, 32>}]} {
    %c0 = arith.constant 0 : index
    %c0_0 = arith.constant 0 : index
    %c0_1 = arith.constant 0 : index
    %0 = vector.load %arg1[%c0, %c0_0, %c0_1] : memref<1x8x96xbf16, #tpu.memory_space<vmem>>, vector<1x8x96xbf16>
    %1 = vector.shape_cast %0 : vector<1x8x96xbf16> to vector<8x96xbf16>
    %2 = arith.extf %1 : vector<8x96xbf16> to vector<8x96xf32>
    %c0_2 = arith.constant 0 : index
    %c0_3 = arith.constant 0 : index
    %c0_4 = arith.constant 0 : index
    %3 = vector.load %arg2[%c0_2, %c0_3, %c0_4] : memref<1x1x8xf32, #tpu.memory_space<vmem>>, vector<1x1x8xf32>
    %4 = vector.shape_cast %3 : vector<1x1x8xf32> to vector<1x8xf32>
    %5 = vector.extract_strided_slice %2 {offsets = [0, 0], sizes = [8, 16], strides = [1, 1]} : vector<8x96xf32> to vector<8x16xf32>
    %6 = vector.extract_strided_slice %2 {offsets = [0, 32], sizes = [8, 16], strides = [1, 1]} : vector<8x96xf32> to vector<8x16xf32>
    %7 = vector.extract_strided_slice %2 {offsets = [0, 64], sizes = [8, 16], strides = [1, 1]} : vector<8x96xf32> to vector<8x16xf32>
    %8 = tpu.transpose %6, [1, 0] : vector<8x16xf32> -> vector<16x8xf32>
    %cst = arith.constant dense<0.000000e+00> : vector<8x8xf32>
    %9 = tpu.matmul %5, %8, %cst {dimension_numbers = #tpu.dot_dimension_numbers<[1], [0], [0], [1], [0, 0, 1, 1], [], []>} : vector<8x16xf32>, vector<16x8xf32>, vector<8x8xf32> -> vector<8x8xf32>
    %cst_5 = arith.constant 2.500000e-01 : f32
    %10 = vector.broadcast %cst_5 : f32 to vector<8x8xf32>
    %11 = arith.mulf %9, %10 : vector<8x8xf32>
    %12 = vector.broadcast %4 : vector<1x8xf32> to vector<8x8xf32>
    %13 = arith.addf %11, %12 : vector<8x8xf32>
    %cst_6 = arith.constant dense<0xFF800000> : vector<8xf32>
    %14 = vector.multi_reduction <maximumf>, %13, %cst_6 [1] : vector<8x8xf32> to vector<8xf32>
    %15 = vector.shape_cast %14 : vector<8xf32> to vector<8x1xf32>
    %16 = vector.broadcast %15 : vector<8x1xf32> to vector<8x8xf32>
    %17 = arith.subf %13, %16 : vector<8x8xf32>
    %18 = math.exp %17 : vector<8x8xf32>
    %cst_7 = arith.constant dense<0.000000e+00> : vector<8xf32>
    %19 = vector.multi_reduction <add>, %18, %cst_7 [1] : vector<8x8xf32> to vector<8xf32>
    %20 = vector.shape_cast %19 : vector<8xf32> to vector<8x1xf32>
    %21 = tpu.reciprocal %20 {approx = true} : vector<8x1xf32> -> vector<8x1xf32>
    %22 = vector.broadcast %21 : vector<8x1xf32> to vector<8x8xf32>
    %23 = arith.mulf %18, %22 : vector<8x8xf32>
    %cst_8 = arith.constant dense<0.000000e+00> : vector<8x16xf32>
    %24 = tpu.matmul %23, %7, %cst_8 {dimension_numbers = #tpu.dot_dimension_numbers<[1], [0], [0], [1], [0, 0, 1, 1], [], []>} : vector<8x8xf32>, vector<8x16xf32>, vector<8x16xf32> -> vector<8x16xf32>
    %25 = vector.extract_strided_slice %2 {offsets = [0, 16], sizes = [8, 16], strides = [1, 1]} : vector<8x96xf32> to vector<8x16xf32>
    %26 = vector.extract_strided_slice %2 {offsets = [0, 48], sizes = [8, 16], strides = [1, 1]} : vector<8x96xf32> to vector<8x16xf32>
    %27 = vector.extract_strided_slice %2 {offsets = [0, 80], sizes = [8, 16], strides = [1, 1]} : vector<8x96xf32> to vector<8x16xf32>
    %28 = tpu.transpose %26, [1, 0] : vector<8x16xf32> -> vector<16x8xf32>
    %cst_9 = arith.constant dense<0.000000e+00> : vector<8x8xf32>
    %29 = tpu.matmul %25, %28, %cst_9 {dimension_numbers = #tpu.dot_dimension_numbers<[1], [0], [0], [1], [0, 0, 1, 1], [], []>} : vector<8x16xf32>, vector<16x8xf32>, vector<8x8xf32> -> vector<8x8xf32>
    %cst_10 = arith.constant 2.500000e-01 : f32
    %30 = vector.broadcast %cst_10 : f32 to vector<8x8xf32>
    %31 = arith.mulf %29, %30 : vector<8x8xf32>
    %32 = vector.broadcast %4 : vector<1x8xf32> to vector<8x8xf32>
    %33 = arith.addf %31, %32 : vector<8x8xf32>
    %cst_11 = arith.constant dense<0xFF800000> : vector<8xf32>
    %34 = vector.multi_reduction <maximumf>, %33, %cst_11 [1] : vector<8x8xf32> to vector<8xf32>
    %35 = vector.shape_cast %34 : vector<8xf32> to vector<8x1xf32>
    %36 = vector.broadcast %35 : vector<8x1xf32> to vector<8x8xf32>
    %37 = arith.subf %33, %36 : vector<8x8xf32>
    %38 = math.exp %37 : vector<8x8xf32>
    %cst_12 = arith.constant dense<0.000000e+00> : vector<8xf32>
    %39 = vector.multi_reduction <add>, %38, %cst_12 [1] : vector<8x8xf32> to vector<8xf32>
    %40 = vector.shape_cast %39 : vector<8xf32> to vector<8x1xf32>
    %41 = tpu.reciprocal %40 {approx = true} : vector<8x1xf32> -> vector<8x1xf32>
    %42 = vector.broadcast %41 : vector<8x1xf32> to vector<8x8xf32>
    %43 = arith.mulf %38, %42 : vector<8x8xf32>
    %cst_13 = arith.constant dense<0.000000e+00> : vector<8x16xf32>
    %44 = tpu.matmul %43, %27, %cst_13 {dimension_numbers = #tpu.dot_dimension_numbers<[1], [0], [0], [1], [0, 0, 1, 1], [], []>} : vector<8x8xf32>, vector<8x16xf32>, vector<8x16xf32> -> vector<8x16xf32>
    %45 = tpu.concatenate %24, %44 in 1 : vector<8x16xf32>, vector<8x16xf32> -> vector<8x32xf32>
    %46 = vector.shape_cast %45 : vector<8x32xf32> to vector<1x8x32xf32>
    %47 = arith.truncf %46 : vector<1x8x32xf32> to vector<1x8x32xbf16>
    %c0_14 = arith.constant 0 : index
    %c0_15 = arith.constant 0 : index
    %c0_16 = arith.constant 0 : index
    %48 = vector.load %arg3[%c0_14, %c0_15, %c0_16] : memref<1x8x32xbf16, #tpu.memory_space<vmem>>, vector<1x8x32xbf16>
    tpu.vector_store %arg3[%c0_14, %c0_15, %c0_16], %47 {strides = array<i32>} : memref<1x8x32xbf16, #tpu.memory_space<vmem>>, vector<1x8x32xbf16>,
    return
  }
  func.func @transform_0(%arg0: i32) -> (i32, i32, i32) {
    %c0_i32 = arith.constant 0 : i32
    %c0_i32_0 = arith.constant 0 : i32
    %c0_i32_1 = arith.constant 0 : i32
    return %arg0, %c0_i32, %c0_i32_0 : i32, i32, i32
  }
  func.func @transform_1(%arg0: i32) -> (i32, i32, i32) {
    %c0_i32 = arith.constant 0 : i32
    %c0_i32_0 = arith.constant 0 : i32
    %c0_i32_1 = arith.constant 0 : i32
    return %arg0, %c0_i32, %c0_i32_0 : i32, i32, i32
  }
  func.func @transform_2(%arg0: i32) -> (i32, i32, i32) {
    %c0_i32 = arith.constant 0 : i32
    %c0_i32_0 = arith.constant 0 : i32
    %c0_i32_1 = arith.constant 0 : i32
    return %arg0, %c0_i32, %c0_i32_0 : i32, i32, i32
  }
}

module attributes {stable_mosaic.version = 11 : i64} {
  func.func @_layernorm_kernel(%arg0: i32, %arg1: memref<16x32xf32, #tpu.memory_space<vmem>>, %arg2: memref<1x32xf32, #tpu.memory_space<vmem>>, %arg3: memref<1x32xf32, #tpu.memory_space<vmem>>, %arg4: memref<16x32xbf16, #tpu.memory_space<vmem>>) attributes {dimension_semantics = [#tpu.dimension_semantics<parallel>], iteration_bounds = array<i64: 1>, scalar_prefetch = 0 : i64, scratch_operands = 0 : i64, tpu.core_type = #tpu.core_type<tc>, window_params = [{transform_indices = @transform_0, window_bounds = array<i64: 16, 32>}, {pipeline_mode = #tpu.pipeline_mode<synchronous>, transform_indices = @transform_1, window_bounds = array<i64: 1, 32>}, {pipeline_mode = #tpu.pipeline_mode<synchronous>, transform_indices = @transform_2, window_bounds = array<i64: 1, 32>}, {transform_indices = @transform_3, window_bounds = array<i64: 16, 32>}]} {
    %c0 = arith.constant 0 : index
    %c0_0 = arith.constant 0 : index
    %0 = vector.load %arg1[%c0, %c0_0] : memref<16x32xf32, #tpu.memory_space<vmem>>, vector<16x32xf32>
    %cst = arith.constant dense<0.000000e+00> : vector<16xf32>
    %1 = vector.multi_reduction <add>, %0, %cst [1] : vector<16x32xf32> to vector<16xf32>
    %2 = vector.shape_cast %1 : vector<16xf32> to vector<16x1xf32>
    %cst_1 = arith.constant 3.200000e+01 : f32
    %3 = vector.broadcast %cst_1 : f32 to vector<16x1xf32>
    %4 = arith.divf %2, %3 : vector<16x1xf32>
    %5 = vector.broadcast %4 : vector<16x1xf32> to vector<16x32xf32>
    %6 = arith.subf %0, %5 : vector<16x32xf32>
    %7 = arith.mulf %6, %6 : vector<16x32xf32>
    %cst_2 = arith.constant dense<0.000000e+00> : vector<16xf32>
    %8 = vector.multi_reduction <add>, %7, %cst_2 [1] : vector<16x32xf32> to vector<16xf32>
    %9 = vector.shape_cast %8 : vector<16xf32> to vector<16x1xf32>
    %cst_3 = arith.constant 3.200000e+01 : f32
    %10 = vector.broadcast %cst_3 : f32 to vector<16x1xf32>
    %11 = arith.divf %9, %10 : vector<16x1xf32>
    %12 = vector.broadcast %4 : vector<16x1xf32> to vector<16x32xf32>
    %13 = arith.subf %0, %12 : vector<16x32xf32>
    %cst_4 = arith.constant 9.99999996E-13 : f32
    %14 = vector.broadcast %cst_4 : f32 to vector<16x1xf32>
    %15 = arith.addf %11, %14 : vector<16x1xf32>
    %16 = math.rsqrt %15 : vector<16x1xf32>
    %17 = vector.broadcast %16 : vector<16x1xf32> to vector<16x32xf32>
    %18 = arith.mulf %13, %17 : vector<16x32xf32>
    %c0_5 = arith.constant 0 : index
    %c0_6 = arith.constant 0 : index
    %19 = vector.load %arg2[%c0_5, %c0_6] : memref<1x32xf32, #tpu.memory_space<vmem>>, vector<1x32xf32>
    %20 = vector.broadcast %19 : vector<1x32xf32> to vector<16x32xf32>
    %21 = arith.mulf %18, %20 : vector<16x32xf32>
    %c0_7 = arith.constant 0 : index
    %c0_8 = arith.constant 0 : index
    %22 = vector.load %arg3[%c0_7, %c0_8] : memref<1x32xf32, #tpu.memory_space<vmem>>, vector<1x32xf32>
    %23 = vector.broadcast %22 : vector<1x32xf32> to vector<16x32xf32>
    %24 = arith.addf %21, %23 : vector<16x32xf32>
    %25 = arith.truncf %24 : vector<16x32xf32> to vector<16x32xbf16>
    %c0_9 = arith.constant 0 : index
    %c0_10 = arith.constant 0 : index
    %26 = vector.load %arg4[%c0_9, %c0_10] : memref<16x32xbf16, #tpu.memory_space<vmem>>, vector<16x32xbf16>
    tpu.vector_store %arg4[%c0_9, %c0_10], %25 {strides = array<i32>} : memref<16x32xbf16, #tpu.memory_space<vmem>>, vector<16x32xbf16>,
    return
  }
  func.func @transform_0(%arg0: i32) -> (i32, i32) {
    %c0_i32 = arith.constant 0 : i32
    %c0_i32_0 = arith.constant 0 : i32
    return %arg0, %c0_i32 : i32, i32
  }
  func.func @transform_1(%arg0: i32) -> (i32, i32) {
    %c0_i32 = arith.constant 0 : i32
    %c0_i32_0 = arith.constant 0 : i32
    %c0_i32_1 = arith.constant 0 : i32
    return %c0_i32, %c0_i32_0 : i32, i32
  }
  func.func @transform_2(%arg0: i32) -> (i32, i32) {
    %c0_i32 = arith.constant 0 : i32
    %c0_i32_0 = arith.constant 0 : i32
    %c0_i32_1 = arith.constant 0 : i32
    return %c0_i32, %c0_i32_0 : i32, i32
  }
  func.func @transform_3(%arg0: i32) -> (i32, i32) {
    %c0_i32 = arith.constant 0 : i32
    %c0_i32_0 = arith.constant 0 : i32
    return %arg0, %c0_i32 : i32, i32
  }
}

module attributes {stable_mosaic.version = 11 : i64} {
  func.func @_linear_kernel(%arg0: i32, %arg1: i32, %arg2: i32, %arg3: memref<16x32xbf16, #tpu.memory_space<vmem>>, %arg4: memref<32x32xbf16, #tpu.memory_space<vmem>>, %arg5: memref<1x32xf32, #tpu.memory_space<vmem>>, %arg6: memref<16x32xbf16, #tpu.memory_space<vmem>>, %arg7: memref<16x32xf32, #tpu.memory_space<vmem>>) attributes {dimension_semantics = [#tpu.dimension_semantics<parallel>, #tpu.dimension_semantics<parallel>, #tpu.dimension_semantics<arbitrary>], iteration_bounds = array<i64: 1, 1, 1>, scalar_prefetch = 0 : i64, scratch_operands = 1 : i64, tpu.core_type = #tpu.core_type<tc>, window_params = [{transform_indices = @transform_0, window_bounds = array<i64: 16, 32>}, {transform_indices = @transform_1, window_bounds = array<i64: 32, 32>}, {transform_indices = @transform_2, window_bounds = array<i64: 1, 32>}, {transform_indices = @transform_3, window_bounds = array<i64: 16, 32>}]} {
    %c0_i32 = arith.constant 0 : i32
    %0 = arith.cmpi eq, %arg2, %c0_i32 : i32
    %1 = arith.extui %0 : i1 to i32
    %c0_i32_0 = arith.constant 0 : i32
    %2 = arith.cmpi ne, %1, %c0_i32_0 : i32
    scf.if %2 {
      %cst_10 = arith.constant 0.000000e+00 : f32
      %12 = vector.broadcast %cst_10 : f32 to vector<16x32xf32>
      %c0_11 = arith.constant 0 : index
      %c0_12 = arith.constant 0 : index
      %13 = vector.load %arg7[%c0_11, %c0_12] : memref<16x32xf32, #tpu.memory_space<vmem>>, vector<16x32xf32>
      tpu.vector_store %arg7[%c0_11, %c0_12], %12 {strides = array<i32>} : memref<16x32xf32, #tpu.memory_space<vmem>>, vector<16x32xf32>,
    } else {
    }
    %c0 = arith.constant 0 : index
    %c0_1 = arith.constant 0 : index
    %3 = vector.load %arg7[%c0, %c0_1] : memref<16x32xf32, #tpu.memory_space<vmem>>, vector<16x32xf32>
    %c0_2 = arith.constant 0 : index
    %c0_3 = arith.constant 0 : index
    %4 = vector.load %arg3[%c0_2, %c0_3] : memref<16x32xbf16, #tpu.memory_space<vmem>>, vector<16x32xbf16>
    %c0_4 = arith.constant 0 : index
    %c0_5 = arith.constant 0 : index
    %5 = vector.load %arg4[%c0_4, %c0_5] : memref<32x32xbf16, #tpu.memory_space<vmem>>, vector<32x32xbf16>
    %cst = arith.constant dense<0.000000e+00> : vector<16x32xf32>
    %6 = tpu.matmul %4, %5, %cst {dimension_numbers = #tpu.dot_dimension_numbers<[1], [0], [0], [1], [0, 0, 1, 1], [], []>} : vector<16x32xbf16>, vector<32x32xbf16>, vector<16x32xf32> -> vector<16x32xf32>
    %7 = arith.addf %3, %6 : vector<16x32xf32>
    %c0_6 = arith.constant 0 : index
    %c0_7 = arith.constant 0 : index
    %8 = vector.load %arg7[%c0_6, %c0_7] : memref<16x32xf32, #tpu.memory_space<vmem>>, vector<16x32xf32>
    tpu.vector_store %arg7[%c0_6, %c0_7], %7 {strides = array<i32>} : memref<16x32xf32, #tpu.memory_space<vmem>>, vector<16x32xf32>,
    %c0_i32_8 = arith.constant 0 : i32
    %9 = arith.cmpi eq, %arg2, %c0_i32_8 : i32
    %10 = arith.extui %9 : i1 to i32
    %c0_i32_9 = arith.constant 0 : i32
    %11 = arith.cmpi ne, %10, %c0_i32_9 : i32
    scf.if %11 {
      %c0_10 = arith.constant 0 : index
      %c0_11 = arith.constant 0 : index
      %12 = vector.load %arg7[%c0_10, %c0_11] : memref<16x32xf32, #tpu.memory_space<vmem>>, vector<16x32xf32>
      %c0_12 = arith.constant 0 : index
      %c0_13 = arith.constant 0 : index
      %13 = vector.load %arg5[%c0_12, %c0_13] : memref<1x32xf32, #tpu.memory_space<vmem>>, vector<1x32xf32>
      %14 = vector.broadcast %13 : vector<1x32xf32> to vector<16x32xf32>
      %15 = arith.addf %12, %14 : vector<16x32xf32>
      %16 = arith.truncf %15 : vector<16x32xf32> to vector<16x32xbf16>
      %c0_14 = arith.constant 0 : index
      %c0_15 = arith.constant 0 : index
      %17 = vector.load %arg6[%c0_14, %c0_15] : memref<16x32xbf16, #tpu.memory_space<vmem>>, vector<16x32xbf16>
      tpu.vector_store %arg6[%c0_14, %c0_15], %16 {strides = array<i32>} : memref<16x32xbf16, #tpu.memory_space<vmem>>, vector<16x32xbf16>,
    } else {
    }
    return
  }
  func.func @transform_0(%arg0: i32, %arg1: i32, %arg2: i32) -> (i32, i32) {
    %c0_i32 = arith.constant 0 : i32
    return %arg0, %arg2 : i32, i32
  }
  func.func @transform_1(%arg0: i32, %arg1: i32, %arg2: i32) -> (i32, i32) {
    %c0_i32 = arith.constant 0 : i32
    return %arg2, %arg1 : i32, i32
  }
  func.func @transform_2(%arg0: i32, %arg1: i32, %arg2: i32) -> (i32, i32) {
    %c0_i32 = arith.constant 0 : i32
    %c0_i32_0 = arith.constant 0 : i32
    return %c0_i32, %arg1 : i32, i32
  }
  func.func @transform_3(%arg0: i32, %arg1: i32, %arg2: i32) -> (i32, i32) {
    %c0_i32 = arith.constant 0 : i32
    return %arg0, %arg1 : i32, i32
  }
}

module attributes {stable_mosaic.version = 11 : i64} {
  func.func @_linear_kernel(%arg0: i32, %arg1: i32, %arg2: i32, %arg3: memref<16x32xbf16, #tpu.memory_space<vmem>>, %arg4: memref<32x96xbf16, #tpu.memory_space<vmem>>, %arg5: memref<1x96xf32, #tpu.memory_space<vmem>>, %arg6: memref<16x96xbf16, #tpu.memory_space<vmem>>, %arg7: memref<16x96xf32, #tpu.memory_space<vmem>>) attributes {dimension_semantics = [#tpu.dimension_semantics<parallel>, #tpu.dimension_semantics<parallel>, #tpu.dimension_semantics<arbitrary>], iteration_bounds = array<i64: 1, 1, 1>, scalar_prefetch = 0 : i64, scratch_operands = 1 : i64, tpu.core_type = #tpu.core_type<tc>, window_params = [{transform_indices = @transform_0, window_bounds = array<i64: 16, 32>}, {transform_indices = @transform_1, window_bounds = array<i64: 32, 96>}, {transform_indices = @transform_2, window_bounds = array<i64: 1, 96>}, {transform_indices = @transform_3, window_bounds = array<i64: 16, 96>}]} {
    %c0_i32 = arith.constant 0 : i32
    %0 = arith.cmpi eq, %arg2, %c0_i32 : i32
    %1 = arith.extui %0 : i1 to i32
    %c0_i32_0 = arith.constant 0 : i32
    %2 = arith.cmpi ne, %1, %c0_i32_0 : i32
    scf.if %2 {
      %cst_10 = arith.constant 0.000000e+00 : f32
      %12 = vector.broadcast %cst_10 : f32 to vector<16x96xf32>
      %c0_11 = arith.constant 0 : index
      %c0_12 = arith.constant 0 : index
      %13 = vector.load %arg7[%c0_11, %c0_12] : memref<16x96xf32, #tpu.memory_space<vmem>>, vector<16x96xf32>
      tpu.vector_store %arg7[%c0_11, %c0_12], %12 {strides = array<i32>} : memref<16x96xf32, #tpu.memory_space<vmem>>, vector<16x96xf32>,
    } else {
    }
    %c0 = arith.constant 0 : index
    %c0_1 = arith.constant 0 : index
    %3 = vector.load %arg7[%c0, %c0_1] : memref<16x96xf32, #tpu.memory_space<vmem>>, vector<16x96xf32>
    %c0_2 = arith.constant 0 : index
    %c0_3 = arith.constant 0 : index
    %4 = vector.load %arg3[%c0_2, %c0_3] : memref<16x32xbf16, #tpu.memory_space<vmem>>, vector<16x32xbf16>
    %c0_4 = arith.constant 0 : index
    %c0_5 = arith.constant 0 : index
    %5 = vector.load %arg4[%c0_4, %c0_5] : memref<32x96xbf16, #tpu.memory_space<vmem>>, vector<32x96xbf16>
    %cst = arith.constant dense<0.000000e+00> : vector<16x96xf32>
    %6 = tpu.matmul %4, %5, %cst {dimension_numbers = #tpu.dot_dimension_numbers<[1], [0], [0], [1], [0, 0, 1, 1], [], []>} : vector<16x32xbf16>, vector<32x96xbf16>, vector<16x96xf32> -> vector<16x96xf32>
    %7 = arith.addf %3, %6 : vector<16x96xf32>
    %c0_6 = arith.constant 0 : index
    %c0_7 = arith.constant 0 : index
    %8 = vector.load %arg7[%c0_6, %c0_7] : memref<16x96xf32, #tpu.memory_space<vmem>>, vector<16x96xf32>
    tpu.vector_store %arg7[%c0_6, %c0_7], %7 {strides = array<i32>} : memref<16x96xf32, #tpu.memory_space<vmem>>, vector<16x96xf32>,
    %c0_i32_8 = arith.constant 0 : i32
    %9 = arith.cmpi eq, %arg2, %c0_i32_8 : i32
    %10 = arith.extui %9 : i1 to i32
    %c0_i32_9 = arith.constant 0 : i32
    %11 = arith.cmpi ne, %10, %c0_i32_9 : i32
    scf.if %11 {
      %c0_10 = arith.constant 0 : index
      %c0_11 = arith.constant 0 : index
      %12 = vector.load %arg7[%c0_10, %c0_11] : memref<16x96xf32, #tpu.memory_space<vmem>>, vector<16x96xf32>
      %c0_12 = arith.constant 0 : index
      %c0_13 = arith.constant 0 : index
      %13 = vector.load %arg5[%c0_12, %c0_13] : memref<1x96xf32, #tpu.memory_space<vmem>>, vector<1x96xf32>
      %14 = vector.broadcast %13 : vector<1x96xf32> to vector<16x96xf32>
      %15 = arith.addf %12, %14 : vector<16x96xf32>
      %16 = arith.truncf %15 : vector<16x96xf32> to vector<16x96xbf16>
      %c0_14 = arith.constant 0 : index
      %c0_15 = arith.constant 0 : index
      %17 = vector.load %arg6[%c0_14, %c0_15] : memref<16x96xbf16, #tpu.memory_space<vmem>>, vector<16x96xbf16>
      tpu.vector_store %arg6[%c0_14, %c0_15], %16 {strides = array<i32>} : memref<16x96xbf16, #tpu.memory_space<vmem>>, vector<16x96xbf16>,
    } else {
    }
    return
  }
  func.func @transform_0(%arg0: i32, %arg1: i32, %arg2: i32) -> (i32, i32) {
    %c0_i32 = arith.constant 0 : i32
    return %arg0, %arg2 : i32, i32
  }
  func.func @transform_1(%arg0: i32, %arg1: i32, %arg2: i32) -> (i32, i32) {
    %c0_i32 = arith.constant 0 : i32
    return %arg2, %arg1 : i32, i32
  }
  func.func @transform_2(%arg0: i32, %arg1: i32, %arg2: i32) -> (i32, i32) {
    %c0_i32 = arith.constant 0 : i32
    %c0_i32_0 = arith.constant 0 : i32
    return %c0_i32, %arg1 : i32, i32
  }
  func.func @transform_3(%arg0: i32, %arg1: i32, %arg2: i32) -> (i32, i32) {
    %c0_i32 = arith.constant 0 : i32
    return %arg0, %arg1 : i32, i32
  }
}

module attributes {stable_mosaic.version = 11 : i64} {
  func.func @_layernorm_kernel(%arg0: i32, %arg1: memref<16x32xbf16, #tpu.memory_space<vmem>>, %arg2: memref<16x32xbf16, #tpu.memory_space<vmem>>, %arg3: memref<1x32xf32, #tpu.memory_space<vmem>>, %arg4: memref<1x32xf32, #tpu.memory_space<vmem>>, %arg5: memref<16x32xbf16, #tpu.memory_space<vmem>>) attributes {dimension_semantics = [#tpu.dimension_semantics<parallel>], iteration_bounds = array<i64: 1>, scalar_prefetch = 0 : i64, scratch_operands = 0 : i64, tpu.core_type = #tpu.core_type<tc>, window_params = [{transform_indices = @transform_0, window_bounds = array<i64: 16, 32>}, {transform_indices = @transform_1, window_bounds = array<i64: 16, 32>}, {pipeline_mode = #tpu.pipeline_mode<synchronous>, transform_indices = @transform_2, window_bounds = array<i64: 1, 32>}, {pipeline_mode = #tpu.pipeline_mode<synchronous>, transform_indices = @transform_3, window_bounds = array<i64: 1, 32>}, {transform_indices = @transform_4, window_bounds = array<i64: 16, 32>}]} {
    %c0 = arith.constant 0 : index
    %c0_0 = arith.constant 0 : index
    %0 = vector.load %arg1[%c0, %c0_0] : memref<16x32xbf16, #tpu.memory_space<vmem>>, vector<16x32xbf16>
    %1 = arith.extf %0 : vector<16x32xbf16> to vector<16x32xf32>
    %c0_1 = arith.constant 0 : index
    %c0_2 = arith.constant 0 : index
    %2 = vector.load %arg2[%c0_1, %c0_2] : memref<16x32xbf16, #tpu.memory_space<vmem>>, vector<16x32xbf16>
    %3 = arith.extf %2 : vector<16x32xbf16> to vector<16x32xf32>
    %4 = arith.addf %1, %3 : vector<16x32xf32>
    %cst = arith.constant dense<0.000000e+00> : vector<16xf32>
    %5 = vector.multi_reduction <add>, %4, %cst [1] : vector<16x32xf32> to vector<16xf32>
    %6 = vector.shape_cast %5 : vector<16xf32> to vector<16x1xf32>
    %cst_3 = arith.constant 3.200000e+01 : f32
    %7 = vector.broadcast %cst_3 : f32 to vector<16x1xf32>
    %8 = arith.divf %6, %7 : vector<16x1xf32>
    %9 = vector.broadcast %8 : vector<16x1xf32> to vector<16x32xf32>
    %10 = arith.subf %4, %9 : vector<16x32xf32>
    %11 = arith.mulf %10, %10 : vector<16x32xf32>
    %cst_4 = arith.constant dense<0.000000e+00> : vector<16xf32>
    %12 = vector.multi_reduction <add>, %11, %cst_4 [1] : vector<16x32xf32> to vector<16xf32>
    %13 = vector.shape_cast %12 : vector<16xf32> to vector<16x1xf32>
    %cst_5 = arith.constant 3.200000e+01 : f32
    %14 = vector.broadcast %cst_5 : f32 to vector<16x1xf32>
    %15 = arith.divf %13, %14 : vector<16x1xf32>
    %16 = vector.broadcast %8 : vector<16x1xf32> to vector<16x32xf32>
    %17 = arith.subf %4, %16 : vector<16x32xf32>
    %cst_6 = arith.constant 9.99999996E-13 : f32
    %18 = vector.broadcast %cst_6 : f32 to vector<16x1xf32>
    %19 = arith.addf %15, %18 : vector<16x1xf32>
    %20 = math.rsqrt %19 : vector<16x1xf32>
    %21 = vector.broadcast %20 : vector<16x1xf32> to vector<16x32xf32>
    %22 = arith.mulf %17, %21 : vector<16x32xf32>
    %c0_7 = arith.constant 0 : index
    %c0_8 = arith.constant 0 : index
    %23 = vector.load %arg3[%c0_7, %c0_8] : memref<1x32xf32, #tpu.memory_space<vmem>>, vector<1x32xf32>
    %24 = vector.broadcast %23 : vector<1x32xf32> to vector<16x32xf32>
    %25 = arith.mulf %22, %24 : vector<16x32xf32>
    %c0_9 = arith.constant 0 : index
    %c0_10 = arith.constant 0 : index
    %26 = vector.load %arg4[%c0_9, %c0_10] : memref<1x32xf32, #tpu.memory_space<vmem>>, vector<1x32xf32>
    %27 = vector.broadcast %26 : vector<1x32xf32> to vector<16x32xf32>
    %28 = arith.addf %25, %27 : vector<16x32xf32>
    %29 = arith.truncf %28 : vector<16x32xf32> to vector<16x32xbf16>
    %c0_11 = arith.constant 0 : index
    %c0_12 = arith.constant 0 : index
    %30 = vector.load %arg5[%c0_11, %c0_12] : memref<16x32xbf16, #tpu.memory_space<vmem>>, vector<16x32xbf16>
    tpu.vector_store %arg5[%c0_11, %c0_12], %29 {strides = array<i32>} : memref<16x32xbf16, #tpu.memory_space<vmem>>, vector<16x32xbf16>,
    return
  }
  func.func @transform_0(%arg0: i32) -> (i32, i32) {
    %c0_i32 = arith.constant 0 : i32
    %c0_i32_0 = arith.constant 0 : i32
    return %arg0, %c0_i32 : i32, i32
  }
  func.func @transform_1(%arg0: i32) -> (i32, i32) {
    %c0_i32 = arith.constant 0 : i32
    %c0_i32_0 = arith.constant 0 : i32
    return %arg0, %c0_i32 : i32, i32
  }
  func.func @transform_2(%arg0: i32) -> (i32, i32) {
    %c0_i32 = arith.constant 0 : i32
    %c0_i32_0 = arith.constant 0 : i32
    %c0_i32_1 = arith.constant 0 : i32
    return %c0_i32, %c0_i32_0 : i32, i32
  }
  func.func @transform_3(%arg0: i32) -> (i32, i32) {
    %c0_i32 = arith.constant 0 : i32
    %c0_i32_0 = arith.constant 0 : i32
    %c0_i32_1 = arith.constant 0 : i32
    return %c0_i32, %c0_i32_0 : i32, i32
  }
  func.func @transform_4(%arg0: i32) -> (i32, i32) {
    %c0_i32 = arith.constant 0 : i32
    %c0_i32_0 = arith.constant 0 : i32
    return %arg0, %c0_i32 : i32, i32
  }
}

module attributes {stable_mosaic.version = 11 : i64} {
  func.func @_linear_kernel(%arg0: i32, %arg1: i32, %arg2: i32, %arg3: memref<16x32xbf16, #tpu.memory_space<vmem>>, %arg4: memref<32x64xbf16, #tpu.memory_space<vmem>>, %arg5: memref<1x64xf32, #tpu.memory_space<vmem>>, %arg6: memref<16x64xbf16, #tpu.memory_space<vmem>>, %arg7: memref<16x64xf32, #tpu.memory_space<vmem>>) attributes {dimension_semantics = [#tpu.dimension_semantics<parallel>, #tpu.dimension_semantics<parallel>, #tpu.dimension_semantics<arbitrary>], iteration_bounds = array<i64: 1, 1, 1>, scalar_prefetch = 0 : i64, scratch_operands = 1 : i64, tpu.core_type = #tpu.core_type<tc>, window_params = [{transform_indices = @transform_0, window_bounds = array<i64: 16, 32>}, {transform_indices = @transform_1, window_bounds = array<i64: 32, 64>}, {transform_indices = @transform_2, window_bounds = array<i64: 1, 64>}, {transform_indices = @transform_3, window_bounds = array<i64: 16, 64>}]} {
    %c0_i32 = arith.constant 0 : i32
    %0 = arith.cmpi eq, %arg2, %c0_i32 : i32
    %1 = arith.extui %0 : i1 to i32
    %c0_i32_0 = arith.constant 0 : i32
    %2 = arith.cmpi ne, %1, %c0_i32_0 : i32
    scf.if %2 {
      %cst_10 = arith.constant 0.000000e+00 : f32
      %12 = vector.broadcast %cst_10 : f32 to vector<16x64xf32>
      %c0_11 = arith.constant 0 : index
      %c0_12 = arith.constant 0 : index
      %13 = vector.load %arg7[%c0_11, %c0_12] : memref<16x64xf32, #tpu.memory_space<vmem>>, vector<16x64xf32>
      tpu.vector_store %arg7[%c0_11, %c0_12], %12 {strides = array<i32>} : memref<16x64xf32, #tpu.memory_space<vmem>>, vector<16x64xf32>,
    } else {
    }
    %c0 = arith.constant 0 : index
    %c0_1 = arith.constant 0 : index
    %3 = vector.load %arg7[%c0, %c0_1] : memref<16x64xf32, #tpu.memory_space<vmem>>, vector<16x64xf32>
    %c0_2 = arith.constant 0 : index
    %c0_3 = arith.constant 0 : index
    %4 = vector.load %arg3[%c0_2, %c0_3] : memref<16x32xbf16, #tpu.memory_space<vmem>>, vector<16x32xbf16>
    %c0_4 = arith.constant 0 : index
    %c0_5 = arith.constant 0 : index
    %5 = vector.load %arg4[%c0_4, %c0_5] : memref<32x64xbf16, #tpu.memory_space<vmem>>, vector<32x64xbf16>
    %cst = arith.constant dense<0.000000e+00> : vector<16x64xf32>
    %6 = tpu.matmul %4, %5, %cst {dimension_numbers = #tpu.dot_dimension_numbers<[1], [0], [0], [1], [0, 0, 1, 1], [], []>} : vector<16x32xbf16>, vector<32x64xbf16>, vector<16x64xf32> -> vector<16x64xf32>
    %7 = arith.addf %3, %6 : vector<16x64xf32>
    %c0_6 = arith.constant 0 : index
    %c0_7 = arith.constant 0 : index
    %8 = vector.load %arg7[%c0_6, %c0_7] : memref<16x64xf32, #tpu.memory_space<vmem>>, vector<16x64xf32>
    tpu.vector_store %arg7[%c0_6, %c0_7], %7 {strides = array<i32>} : memref<16x64xf32, #tpu.memory_space<vmem>>, vector<16x64xf32>,
    %c0_i32_8 = arith.constant 0 : i32
    %9 = arith.cmpi eq, %arg2, %c0_i32_8 : i32
    %10 = arith.extui %9 : i1 to i32
    %c0_i32_9 = arith.constant 0 : i32
    %11 = arith.cmpi ne, %10, %c0_i32_9 : i32
    scf.if %11 {
      %c0_10 = arith.constant 0 : index
      %c0_11 = arith.constant 0 : index
      %12 = vector.load %arg7[%c0_10, %c0_11] : memref<16x64xf32, #tpu.memory_space<vmem>>, vector<16x64xf32>
      %c0_12 = arith.constant 0 : index
      %c0_13 = arith.constant 0 : index
      %13 = vector.load %arg5[%c0_12, %c0_13] : memref<1x64xf32, #tpu.memory_space<vmem>>, vector<1x64xf32>
      %14 = vector.broadcast %13 : vector<1x64xf32> to vector<16x64xf32>
      %15 = arith.addf %12, %14 : vector<16x64xf32>
      %16 = arith.mulf %15, %15 : vector<16x64xf32>
      %17 = arith.mulf %15, %16 : vector<16x64xf32>
      %cst_14 = arith.constant 4.471500e-02 : f32
      %18 = vector.broadcast %cst_14 : f32 to vector<16x64xf32>
      %19 = arith.mulf %18, %17 : vector<16x64xf32>
      %20 = arith.addf %15, %19 : vector<16x64xf32>
      %cst_15 = arith.constant 0.797884583 : f32
      %21 = vector.broadcast %cst_15 : f32 to vector<16x64xf32>
      %22 = arith.mulf %21, %20 : vector<16x64xf32>
      %23 = math.tanh %22 : vector<16x64xf32>
      %cst_16 = arith.constant 1.000000e+00 : f32
      %24 = vector.broadcast %cst_16 : f32 to vector<16x64xf32>
      %25 = arith.addf %24, %23 : vector<16x64xf32>
      %cst_17 = arith.constant 5.000000e-01 : f32
      %26 = vector.broadcast %cst_17 : f32 to vector<16x64xf32>
      %27 = arith.mulf %26, %25 : vector<16x64xf32>
      %28 = arith.mulf %15, %27 : vector<16x64xf32>
      %29 = arith.truncf %28 : vector<16x64xf32> to vector<16x64xbf16>
      %c0_18 = arith.constant 0 : index
      %c0_19 = arith.constant 0 : index
      %30 = vector.load %arg6[%c0_18, %c0_19] : memref<16x64xbf16, #tpu.memory_space<vmem>>, vector<16x64xbf16>
      tpu.vector_store %arg6[%c0_18, %c0_19], %29 {strides = array<i32>} : memref<16x64xbf16, #tpu.memory_space<vmem>>, vector<16x64xbf16>,
    } else {
    }
    return
  }
  func.func @transform_0(%arg0: i32, %arg1: i32, %arg2: i32) -> (i32, i32) {
    %c0_i32 = arith.constant 0 : i32
    return %arg0, %arg2 : i32, i32
  }
  func.func @transform_1(%arg0: i32, %arg1: i32, %arg2: i32) -> (i32, i32) {
    %c0_i32 = arith.constant 0 : i32
    return %arg2, %arg1 : i32, i32
  }
  func.func @transform_2(%arg0: i32, %arg1: i32, %arg2: i32) -> (i32, i32) {
    %c0_i32 = arith.constant 0 : i32
    %c0_i32_0 = arith.constant 0 : i32
    return %c0_i32, %arg1 : i32, i32
  }
  func.func @transform_3(%arg0: i32, %arg1: i32, %arg2: i32) -> (i32, i32) {
    %c0_i32 = arith.constant 0 : i32
    return %arg0, %arg1 : i32, i32
  }
}

module attributes {stable_mosaic.version = 11 : i64} {
  func.func @_linear_kernel(%arg0: i32, %arg1: i32, %arg2: i32, %arg3: memref<16x64xbf16, #tpu.memory_space<vmem>>, %arg4: memref<64x32xbf16, #tpu.memory_space<vmem>>, %arg5: memref<1x32xf32, #tpu.memory_space<vmem>>, %arg6: memref<16x32xbf16, #tpu.memory_space<vmem>>, %arg7: memref<16x32xf32, #tpu.memory_space<vmem>>) attributes {dimension_semantics = [#tpu.dimension_semantics<parallel>, #tpu.dimension_semantics<parallel>, #tpu.dimension_semantics<arbitrary>], iteration_bounds = array<i64: 1, 1, 1>, scalar_prefetch = 0 : i64, scratch_operands = 1 : i64, tpu.core_type = #tpu.core_type<tc>, window_params = [{transform_indices = @transform_0, window_bounds = array<i64: 16, 64>}, {transform_indices = @transform_1, window_bounds = array<i64: 64, 32>}, {transform_indices = @transform_2, window_bounds = array<i64: 1, 32>}, {transform_indices = @transform_3, window_bounds = array<i64: 16, 32>}]} {
    %c0_i32 = arith.constant 0 : i32
    %0 = arith.cmpi eq, %arg2, %c0_i32 : i32
    %1 = arith.extui %0 : i1 to i32
    %c0_i32_0 = arith.constant 0 : i32
    %2 = arith.cmpi ne, %1, %c0_i32_0 : i32
    scf.if %2 {
      %cst_10 = arith.constant 0.000000e+00 : f32
      %12 = vector.broadcast %cst_10 : f32 to vector<16x32xf32>
      %c0_11 = arith.constant 0 : index
      %c0_12 = arith.constant 0 : index
      %13 = vector.load %arg7[%c0_11, %c0_12] : memref<16x32xf32, #tpu.memory_space<vmem>>, vector<16x32xf32>
      tpu.vector_store %arg7[%c0_11, %c0_12], %12 {strides = array<i32>} : memref<16x32xf32, #tpu.memory_space<vmem>>, vector<16x32xf32>,
    } else {
    }
    %c0 = arith.constant 0 : index
    %c0_1 = arith.constant 0 : index
    %3 = vector.load %arg7[%c0, %c0_1] : memref<16x32xf32, #tpu.memory_space<vmem>>, vector<16x32xf32>
    %c0_2 = arith.constant 0 : index
    %c0_3 = arith.constant 0 : index
    %4 = vector.load %arg3[%c0_2, %c0_3] : memref<16x64xbf16, #tpu.memory_space<vmem>>, vector<16x64xbf16>
    %c0_4 = arith.constant 0 : index
    %c0_5 = arith.constant 0 : index
    %5 = vector.load %arg4[%c0_4, %c0_5] : memref<64x32xbf16, #tpu.memory_space<vmem>>, vector<64x32xbf16>
    %cst = arith.constant dense<0.000000e+00> : vector<16x32xf32>
    %6 = tpu.matmul %4, %5, %cst {dimension_numbers = #tpu.dot_dimension_numbers<[1], [0], [0], [1], [0, 0, 1, 1], [], []>} : vector<16x64xbf16>, vector<64x32xbf16>, vector<16x32xf32> -> vector<16x32xf32>
    %7 = arith.addf %3, %6 : vector<16x32xf32>
    %c0_6 = arith.constant 0 : index
    %c0_7 = arith.constant 0 : index
    %8 = vector.load %arg7[%c0_6, %c0_7] : memref<16x32xf32, #tpu.memory_space<vmem>>, vector<16x32xf32>
    tpu.vector_store %arg7[%c0_6, %c0_7], %7 {strides = array<i32>} : memref<16x32xf32, #tpu.memory_space<vmem>>, vector<16x32xf32>,
    %c0_i32_8 = arith.constant 0 : i32
    %9 = arith.cmpi eq, %arg2, %c0_i32_8 : i32
    %10 = arith.extui %9 : i1 to i32
    %c0_i32_9 = arith.constant 0 : i32
    %11 = arith.cmpi ne, %10, %c0_i32_9 : i32
    scf.if %11 {
      %c0_10 = arith.constant 0 : index
      %c0_11 = arith.constant 0 : index
      %12 = vector.load %arg7[%c0_10, %c0_11] : memref<16x32xf32, #tpu.memory_space<vmem>>, vector<16x32xf32>
      %c0_12 = arith.constant 0 : index
      %c0_13 = arith.constant 0 : index
      %13 = vector.load %arg5[%c0_12, %c0_13] : memref<1x32xf32, #tpu.memory_space<vmem>>, vector<1x32xf32>
      %14 = vector.broadcast %13 : vector<1x32xf32> to vector<16x32xf32>
      %15 = arith.addf %12, %14 : vector<16x32xf32>
      %16 = arith.truncf %15 : vector<16x32xf32> to vector<16x32xbf16>
      %c0_14 = arith.constant 0 : index
      %c0_15 = arith.constant 0 : index
      %17 = vector.load %arg6[%c0_14, %c0_15] : memref<16x32xbf16, #tpu.memory_space<vmem>>, vector<16x32xbf16>
      tpu.vector_store %arg6[%c0_14, %c0_15], %16 {strides = array<i32>} : memref<16x32xbf16, #tpu.memory_space<vmem>>, vector<16x32xbf16>,
    } else {
    }
    return
  }
  func.func @transform_0(%arg0: i32, %arg1: i32, %arg2: i32) -> (i32, i32) {
    %c0_i32 = arith.constant 0 : i32
    return %arg0, %arg2 : i32, i32
  }
  func.func @transform_1(%arg0: i32, %arg1: i32, %arg2: i32) -> (i32, i32) {
    %c0_i32 = arith.constant 0 : i32
    return %arg2, %arg1 : i32, i32
  }
  func.func @transform_2(%arg0: i32, %arg1: i32, %arg2: i32) -> (i32, i32) {
    %c0_i32 = arith.constant 0 : i32
    %c0_i32_0 = arith.constant 0 : i32
    return %c0_i32, %arg1 : i32, i32
  }
  func.func @transform_3(%arg0: i32, %arg1: i32, %arg2: i32) -> (i32, i32) {
    %c0_i32 = arith.constant 0 : i32
    return %arg0, %arg1 : i32, i32
  }
}

module attributes {stable_mosaic.version = 11 : i64} {
  func.func @_linear_kernel(%arg0: i32, %arg1: i32, %arg2: i32, %arg3: memref<2x32xbf16, #tpu.memory_space<vmem>>, %arg4: memref<32x32xbf16, #tpu.memory_space<vmem>>, %arg5: memref<1x32xf32, #tpu.memory_space<vmem>>, %arg6: memref<2x32xbf16, #tpu.memory_space<vmem>>, %arg7: memref<2x32xf32, #tpu.memory_space<vmem>>) attributes {dimension_semantics = [#tpu.dimension_semantics<parallel>, #tpu.dimension_semantics<parallel>, #tpu.dimension_semantics<arbitrary>], iteration_bounds = array<i64: 1, 1, 1>, scalar_prefetch = 0 : i64, scratch_operands = 1 : i64, tpu.core_type = #tpu.core_type<tc>, window_params = [{transform_indices = @transform_0, window_bounds = array<i64: 2, 32>}, {transform_indices = @transform_1, window_bounds = array<i64: 32, 32>}, {transform_indices = @transform_2, window_bounds = array<i64: 1, 32>}, {transform_indices = @transform_3, window_bounds = array<i64: 2, 32>}]} {
    %c0_i32 = arith.constant 0 : i32
    %0 = arith.cmpi eq, %arg2, %c0_i32 : i32
    %1 = arith.extui %0 : i1 to i32
    %c0_i32_0 = arith.constant 0 : i32
    %2 = arith.cmpi ne, %1, %c0_i32_0 : i32
    scf.if %2 {
      %cst_10 = arith.constant 0.000000e+00 : f32
      %12 = vector.broadcast %cst_10 : f32 to vector<2x32xf32>
      %c0_11 = arith.constant 0 : index
      %c0_12 = arith.constant 0 : index
      %13 = vector.load %arg7[%c0_11, %c0_12] : memref<2x32xf32, #tpu.memory_space<vmem>>, vector<2x32xf32>
      tpu.vector_store %arg7[%c0_11, %c0_12], %12 {strides = array<i32>} : memref<2x32xf32, #tpu.memory_space<vmem>>, vector<2x32xf32>,
    } else {
    }
    %c0 = arith.constant 0 : index
    %c0_1 = arith.constant 0 : index
    %3 = vector.load %arg7[%c0, %c0_1] : memref<2x32xf32, #tpu.memory_space<vmem>>, vector<2x32xf32>
    %c0_2 = arith.constant 0 : index
    %c0_3 = arith.constant 0 : index
    %4 = vector.load %arg3[%c0_2, %c0_3] : memref<2x32xbf16, #tpu.memory_space<vmem>>, vector<2x32xbf16>
    %c0_4 = arith.constant 0 : index
    %c0_5 = arith.constant 0 : index
    %5 = vector.load %arg4[%c0_4, %c0_5] : memref<32x32xbf16, #tpu.memory_space<vmem>>, vector<32x32xbf16>
    %cst = arith.constant dense<0.000000e+00> : vector<2x32xf32>
    %6 = tpu.matmul %4, %5, %cst {dimension_numbers = #tpu.dot_dimension_numbers<[1], [0], [0], [1], [0, 0, 1, 1], [], []>} : vector<2x32xbf16>, vector<32x32xbf16>, vector<2x32xf32> -> vector<2x32xf32>
    %7 = arith.addf %3, %6 : vector<2x32xf32>
    %c0_6 = arith.constant 0 : index
    %c0_7 = arith.constant 0 : index
    %8 = vector.load %arg7[%c0_6, %c0_7] : memref<2x32xf32, #tpu.memory_space<vmem>>, vector<2x32xf32>
    tpu.vector_store %arg7[%c0_6, %c0_7], %7 {strides = array<i32>} : memref<2x32xf32, #tpu.memory_space<vmem>>, vector<2x32xf32>,
    %c0_i32_8 = arith.constant 0 : i32
    %9 = arith.cmpi eq, %arg2, %c0_i32_8 : i32
    %10 = arith.extui %9 : i1 to i32
    %c0_i32_9 = arith.constant 0 : i32
    %11 = arith.cmpi ne, %10, %c0_i32_9 : i32
    scf.if %11 {
      %c0_10 = arith.constant 0 : index
      %c0_11 = arith.constant 0 : index
      %12 = vector.load %arg7[%c0_10, %c0_11] : memref<2x32xf32, #tpu.memory_space<vmem>>, vector<2x32xf32>
      %c0_12 = arith.constant 0 : index
      %c0_13 = arith.constant 0 : index
      %13 = vector.load %arg5[%c0_12, %c0_13] : memref<1x32xf32, #tpu.memory_space<vmem>>, vector<1x32xf32>
      %14 = vector.broadcast %13 : vector<1x32xf32> to vector<2x32xf32>
      %15 = arith.addf %12, %14 : vector<2x32xf32>
      %16 = math.tanh %15 : vector<2x32xf32>
      %17 = arith.truncf %16 : vector<2x32xf32> to vector<2x32xbf16>
      %c0_14 = arith.constant 0 : index
      %c0_15 = arith.constant 0 : index
      %18 = vector.load %arg6[%c0_14, %c0_15] : memref<2x32xbf16, #tpu.memory_space<vmem>>, vector<2x32xbf16>
      tpu.vector_store %arg6[%c0_14, %c0_15], %17 {strides = array<i32>} : memref<2x32xbf16, #tpu.memory_space<vmem>>, vector<2x32xbf16>,
    } else {
    }
    return
  }
  func.func @transform_0(%arg0: i32, %arg1: i32, %arg2: i32) -> (i32, i32) {
    %c0_i32 = arith.constant 0 : i32
    return %arg0, %arg2 : i32, i32
  }
  func.func @transform_1(%arg0: i32, %arg1: i32, %arg2: i32) -> (i32, i32) {
    %c0_i32 = arith.constant 0 : i32
    return %arg2, %arg1 : i32, i32
  }
  func.func @transform_2(%arg0: i32, %arg1: i32, %arg2: i32) -> (i32, i32) {
    %c0_i32 = arith.constant 0 : i32
    %c0_i32_0 = arith.constant 0 : i32
    return %c0_i32, %arg1 : i32, i32
  }
  func.func @transform_3(%arg0: i32, %arg1: i32, %arg2: i32) -> (i32, i32) {
    %c0_i32 = arith.constant 0 : i32
    return %arg0, %arg1 : i32, i32
  }
}

module attributes {stable_mosaic.version = 11 : i64} {
  func.func @_linear_kernel(%arg0: i32, %arg1: i32, %arg2: i32, %arg3: memref<2x32xbf16, #tpu.memory_space<vmem>>, %arg4: memref<32x16xbf16, #tpu.memory_space<vmem>>, %arg5: memref<1x16xf32, #tpu.memory_space<vmem>>, %arg6: memref<2x16xf32, #tpu.memory_space<vmem>>, %arg7: memref<2x16xf32, #tpu.memory_space<vmem>>) attributes {dimension_semantics = [#tpu.dimension_semantics<parallel>, #tpu.dimension_semantics<parallel>, #tpu.dimension_semantics<arbitrary>], iteration_bounds = array<i64: 1, 1, 1>, scalar_prefetch = 0 : i64, scratch_operands = 1 : i64, tpu.core_type = #tpu.core_type<tc>, window_params = [{transform_indices = @transform_0, window_bounds = array<i64: 2, 32>}, {transform_indices = @transform_1, window_bounds = array<i64: 32, 16>}, {transform_indices = @transform_2, window_bounds = array<i64: 1, 16>}, {transform_indices = @transform_3, window_bounds = array<i64: 2, 16>}]} {
    %c0_i32 = arith.constant 0 : i32
    %0 = arith.cmpi eq, %arg2, %c0_i32 : i32
    %1 = arith.extui %0 : i1 to i32
    %c0_i32_0 = arith.constant 0 : i32
    %2 = arith.cmpi ne, %1, %c0_i32_0 : i32
    scf.if %2 {
      %cst_10 = arith.constant 0.000000e+00 : f32
      %12 = vector.broadcast %cst_10 : f32 to vector<2x16xf32>
      %c0_11 = arith.constant 0 : index
      %c0_12 = arith.constant 0 : index
      %13 = vector.load %arg7[%c0_11, %c0_12] : memref<2x16xf32, #tpu.memory_space<vmem>>, vector<2x16xf32>
      tpu.vector_store %arg7[%c0_11, %c0_12], %12 {strides = array<i32>} : memref<2x16xf32, #tpu.memory_space<vmem>>, vector<2x16xf32>,
    } else {
    }
    %c0 = arith.constant 0 : index
    %c0_1 = arith.constant 0 : index
    %3 = vector.load %arg7[%c0, %c0_1] : memref<2x16xf32, #tpu.memory_space<vmem>>, vector<2x16xf32>
    %c0_2 = arith.constant 0 : index
    %c0_3 = arith.constant 0 : index
    %4 = vector.load %arg3[%c0_2, %c0_3] : memref<2x32xbf16, #tpu.memory_space<vmem>>, vector<2x32xbf16>
    %c0_4 = arith.constant 0 : index
    %c0_5 = arith.constant 0 : index
    %5 = vector.load %arg4[%c0_4, %c0_5] : memref<32x16xbf16, #tpu.memory_space<vmem>>, vector<32x16xbf16>
    %cst = arith.constant dense<0.000000e+00> : vector<2x16xf32>
    %6 = tpu.matmul %4, %5, %cst {dimension_numbers = #tpu.dot_dimension_numbers<[1], [0], [0], [1], [0, 0, 1, 1], [], []>} : vector<2x32xbf16>, vector<32x16xbf16>, vector<2x16xf32> -> vector<2x16xf32>
    %7 = arith.addf %3, %6 : vector<2x16xf32>
    %c0_6 = arith.constant 0 : index
    %c0_7 = arith.constant 0 : index
    %8 = vector.load %arg7[%c0_6, %c0_7] : memref<2x16xf32, #tpu.memory_space<vmem>>, vector<2x16xf32>
    tpu.vector_store %arg7[%c0_6, %c0_7], %7 {strides = array<i32>} : memref<2x16xf32, #tpu.memory_space<vmem>>, vector<2x16xf32>,
    %c0_i32_8 = arith.constant 0 : i32
    %9 = arith.cmpi eq, %arg2, %c0_i32_8 : i32
    %10 = arith.extui %9 : i1 to i32
    %c0_i32_9 = arith.constant 0 : i32
    %11 = arith.cmpi ne, %10, %c0_i32_9 : i32
    scf.if %11 {
      %c0_10 = arith.constant 0 : index
      %c0_11 = arith.constant 0 : index
      %12 = vector.load %arg7[%c0_10, %c0_11] : memref<2x16xf32, #tpu.memory_space<vmem>>, vector<2x16xf32>
      %c0_12 = arith.constant 0 : index
      %c0_13 = arith.constant 0 : index
      %13 = vector.load %arg5[%c0_12, %c0_13] : memref<1x16xf32, #tpu.memory_space<vmem>>, vector<1x16xf32>
      %14 = vector.broadcast %13 : vector<1x16xf32> to vector<2x16xf32>
      %15 = arith.addf %12, %14 : vector<2x16xf32>
      %16 = arith.negf %15 : vector<2x16xf32>
      %17 = math.exp %16 : vector<2x16xf32>
      %cst_14 = arith.constant 1.000000e+00 : f32
      %18 = vector.broadcast %cst_14 : f32 to vector<2x16xf32>
      %19 = arith.addf %18, %17 : vector<2x16xf32>
      %20 = arith.divf %18, %19 : vector<2x16xf32>
      %c0_15 = arith.constant 0 : index
      %c0_16 = arith.constant 0 : index
      %21 = vector.load %arg6[%c0_15, %c0_16] : memref<2x16xf32, #tpu.memory_space<vmem>>, vector<2x16xf32>
      tpu.vector_store %arg6[%c0_15, %c0_16], %20 {strides = array<i32>} : memref<2x16xf32, #tpu.memory_space<vmem>>, vector<2x16xf32>,
    } else {
    }
    return
  }
  func.func @transform_0(%arg0: i32, %arg1: i32, %arg2: i32) -> (i32, i32) {
    %c0_i32 = arith.constant 0 : i32
    return %arg0, %arg2 : i32, i32
  }
  func.func @transform_1(%arg0: i32, %arg1: i32, %arg2: i32) -> (i32, i32) {
    %c0_i32 = arith.constant 0 : i32
    return %arg2, %arg1 : i32, i32
  }
  func.func @transform_2(%arg0: i32, %arg1: i32, %arg2: i32) -> (i32, i32) {
    %c0_i32 = arith.constant 0 : i32
    %c0_i32_0 = arith.constant 0 : i32
    return %c0_i32, %arg1 : i32, i32
  }
  func.func @transform_3(%arg0: i32, %arg1: i32, %arg2: i32) -> (i32, i32) {
    %c0_i32 = arith.constant 0 : i32
    return %arg0, %arg1 : i32, i32
  }
}

</mosaic_0001>

<bundles_post_ra>
// kernel: bert_base_forward.17
= control target key start
LH: loop header
LB: loop body
LE: loop exit
PB: predicated region body
PF: predicated region fallthrough
CT: control target
= control target key end

     0   :  { %vm16_vm0 = vcmask 261120   ;;  %vm70_vm1 = vcmask 257024   ;;  %s129_s0 = inlined_call_operand.vmem [shape: f32[16,32], index: 0, kind: input, shape index: {}]   ;;  %s130_s1 = inlined_call_operand.vmem [shape: f32[1,32], index: 1, kind: input, shape index: {}]   ;;  %s131_s2 = inlined_call_operand.vmem [shape: f32[1,32], index: 2, kind: input, shape index: {}]   ;;  %s132_s3 = inlined_call_operand.vmem [shape: bf16[16,32], index: 3, kind: output, shape index: {}]  }
   0x1   :  { %v14_v0 = vld [vmem:[%s129_s0] sm:$0xff]  ;;  %v15_v1 = vld [vmem:[%s129_s0 + $0x8] sm:$0xff] }
   0x2   :  { %v17_v2 = vsel %vm16_vm0, %v14_v0, 0.0  ;;  %v20_v3 = vsel %vm16_vm0, %v15_v1, 0.0  ;;  %v77_v21 = vld [vmem:[%s130_s1] ss:$0 sm:$0xff] }
   0x3   :  { %18 = vadd.xlane.f32.xlu0 %v17_v2  ;;  %v78_v23 = vld [vmem:[%s131_s2] ss:$0 sm:$0xff] }
   0x7   :  { %21 = vadd.xlane.f32.xlu0 %v20_v3 }
  0x90   :  { %v19_v4 = vpop.xlane.xlu0 %18 }
  0x91   :  { %v24_v5 = vmul.f32 0.03125, %v19_v4 }
  0x93   :  { %v26_v6 = vsub.f32 %v14_v0, %v24_v5 }
  0x94   :  { %v22_v7 = vpop.xlane.xlu0 %21 }
  0x95   :  { %v25_v8 = vmul.f32 0.03125, %v22_v7  ;;  %v28_v9 = vmul.f32 %v26_v6, %v26_v6 }
  0x97   :  { %v27_v10 = vsub.f32 %v15_v1, %v25_v8  ;;  %v30_v11 = vsel %vm16_vm0, %v28_v9, 0.0 }
  0x98   :  { %31 = vadd.xlane.f32.xlu1 %v30_v11 }
  0x99   :  { %v29_v12 = vmul.f32 %v27_v10, %v27_v10 }
  0x9b   :  { %v33_v13 = vsel %vm16_vm0, %v29_v12, 0.0 }
  0x9c   :  { %34 = vadd.xlane.f32.xlu1 %v33_v13 }
 0x125   :  { %v32_v14 = vpop.xlane.xlu1 %31 }
 0x126   :  { %v36_v15 = vmul.f32 0.03125, %v32_v14 }
 0x128   :  { %v38_v16 = vadd.f32 1e-12, %v36_v15 }
 0x129   :  { %v35_v17 = vpop.xlane.xlu1 %34 }
 0x12a   :  { %83 = vrsqrt.f32 %v38_v16  ;;  %v37_v18 = vmul.f32 0.03125, %v35_v17 }
 0x12c   :  { %v39_v19 = vadd.f32 1e-12, %v37_v18 }
 0x12e   :  { %85 = vrsqrt.f32 %v39_v19 }
 0x134   :  { %v84_v20 = vpop.eup %83 }
 0x135   :  { %v42_v22 = vmul.f32 %v84_v20, %v26_v6 }
 0x137   :  { %v51_v24 = vmul.f32 %v77_v21, %v42_v22 }
 0x138   :  { %v86_v25 = vpop.eup %85 }
 0x139   :  { %v60_v26 = vadd.f32 %v78_v23, %v51_v24  ;;  %v43_v27 = vmul.f32 %v86_v25, %v27_v10 }
 0x13b   :  { %v81_v28 = vpack.c.bf16 %v60_v26, %v60_v26  ;;  %v52_v29 = vmul.f32 %v77_v21, %v43_v27 }
 0x13d   :  { %71 = vst.msk [vmem:[%s132_s3] sm:$0xf] %vm70_vm1, %v81_v28  ;;  %v61_v30 = vadd.f32 %v78_v23, %v52_v29 }
 0x13f   :  { %v82_v31 = vpack.c.bf16 %v61_v30, %v61_v30 }
 0x141   :  { %72 = vst.msk [vmem:[%s132_s3 + $0x4] sm:$0xf] %vm70_vm1, %v82_v31 }

// kernel: bert_base_forward.20
= control target key start
LH: loop header
LB: loop body
LE: loop exit
PB: predicated region body
PF: predicated region fallthrough
CT: control target
= control target key end

     0   :  { %vm19_vm0 = vcmask 261120   ;;  %v150_v0 = vmov 0.0   ;;  %vm151_vm1 = vmmov 0   ;;  %vm118_vm2 = vcmask 257024   ;;  %s195_s1 = inlined_call_operand.vmem [shape: bf16[32,32], index: 1, kind: input, shape index: {}]   ;;  %s196_s0 = inlined_call_operand.vmem [shape: bf16[16,32], index: 0, kind: input, shape index: {}]   ;;  %s197_s2 = inlined_call_operand.vmem [shape: f32[1,32], index: 2, kind: input, shape index: {}]   ;;  %s198_s3 = inlined_call_operand.vmem [shape: bf16[16,32], index: 3, kind: output, shape index: {}]  }
   0x1   :  { %137 = vmatprep.subr.bf16.mxu0 %v150_v0  ;;  %v147_v1 = vld [vmem:[%s195_s1] sm:$0xff]   ;;  %141 = vmatprep.mubr.msk.bf16.mxu0 %vm151_vm1, %v150_v0  ;;  %20 = vst.msk [vmem:[#allocation2] sm:$0xff] %vm19_vm0, %v150_v0  ;;  %21 = vst.msk [vmem:[#allocation2 + $0x8] sm:$0xff] %vm19_vm0, %v150_v0  ;;  %v148_v2 = vld [vmem:[%s195_s1 + $0x8] sm:$0xff]  }
   0x2   :  { %138 = vmatpush3.bf16.msra.mxu0 %v147_v1  ;;  %v149_v3 = vld [vmem:[%s196_s0] sm:$0xff]  }
   0x3   :  { %139 = vmatprep.subr.bf16.mxu0 %v150_v0  ;;  %v129_v12 = vld [vmem:[%s197_s2] ss:$0 sm:$0xff] }
   0x6   :  { %140 = vmatpush3.bf16.msra.mxu0 %v148_v2 }
   0x8   :  { %v22_v4 = vld [vmem:[#allocation2] sm:$0xff]  ;;  %v23_v6 = vld [vmem:[#allocation2 + $0x8] sm:$0xff] }
   0x9   :  { %142 = vmatmul.mubr.msk.bf16.vlgmr.msra.gmra.mrb[0].mxu0 %vm19_vm0, %v149_v3 }
  0xdc   :  { %v85_v5 = vpop.f32.mrb[0].mxu0 }
  0xdd   :  { %v92_v7 = vadd.f32 %v85_v5, %v22_v4  ;;  %v143_v8 = vpop.f32.mrb[1].mxu0 }
  0xde   :  { %v88_v9 = vpop.f32.mrb[2].mxu0 }
  0xdf   :  { %94 = vst.msk [vmem:[#allocation2] sm:$0xff] %vm19_vm0, %v92_v7  ;;  %v93_v10 = vadd.f32 %v88_v9, %v23_v6  ;;  %v144_v11 = vpop.f32.mrb[3].mxu0 }
  0xe1   :  { %95 = vst.msk [vmem:[#allocation2 + $0x8] sm:$0xff] %vm19_vm0, %v93_v10 }
  0xe6   :  { %v99_v13 = vld [vmem:[#allocation2] sm:$0xff] }
  0xe7   :  { %v108_v14 = vadd.f32 %v129_v12, %v99_v13 }
  0xe8   :  { %v100_v15 = vld [vmem:[#allocation2 + $0x8] sm:$0xff] }
  0xe9   :  { %v132_v16 = vpack.c.bf16 %v108_v14, %v108_v14  ;;  %v109_v17 = vadd.f32 %v129_v12, %v100_v15 }
  0xeb   :  { %119 = vst.msk [vmem:[%s198_s3] sm:$0xf] %vm118_vm2, %v132_v16  ;;  %v133_v18 = vpack.c.bf16 %v109_v17, %v109_v17 }
  0xed   :  { %120 = vst.msk [vmem:[%s198_s3 + $0x4] sm:$0xf] %vm118_vm2, %v133_v18 }

// kernel: bert_base_forward.18
= control target key start
LH: loop header
LB: loop body
LE: loop exit
PB: predicated region body
PF: predicated region fallthrough
CT: control target
= control target key end

     0   :  { %vm19_vm0 = vcmask 785408   ;;  %v151_v0 = vmov 0.0   ;;  %vm152_vm1 = vmmov 0   ;;  %vm47_vm2 = vcmask 261120   ;;  %s195_s1 = inlined_call_operand.vmem [shape: bf16[32,96], index: 1, kind: input, shape index: {}]   ;;  %s196_s0 = inlined_call_operand.vmem [shape: bf16[16,32], index: 0, kind: input, shape index: {}]   ;;  %s197_s2 = inlined_call_operand.vmem [shape: f32[1,96], index: 2, kind: input, shape index: {}]   ;;  %s198_s3 = inlined_call_operand.vmem [shape: bf16[16,96], index: 3, kind: output, shape index: {}]  }
   0x1   :  { %138 = vmatprep.subr.bf16.mxu0 %v151_v0  ;;  %v148_v1 = vld [vmem:[%s195_s1] sm:$0xff]   ;;  %142 = vmatprep.mubr.msk.bf16.mxu0 %vm152_vm1, %v151_v0  ;;  %20 = vst.msk [vmem:[#allocation2] sm:$0xff] %vm19_vm0, %v151_v0  ;;  %21 = vst.msk [vmem:[#allocation2 + $0x8] sm:$0xff] %vm19_vm0, %v151_v0  ;;  %v149_v2 = vld [vmem:[%s195_s1 + $0x8] sm:$0xff]   ;;  %vm119_vm3 = vcmask 781312  }
   0x2   :  { %139 = vmatpush3.bf16.msra.mxu0 %v148_v1  ;;  %v150_v3 = vld [vmem:[%s196_s0] sm:$0xff]  }
   0x3   :  { %140 = vmatprep.subr.bf16.mxu0 %v151_v0  ;;  %v130_v12 = vld [vmem:[%s197_s2] ss:$0 sm:$0xff] }
   0x6   :  { %141 = vmatpush3.bf16.msra.mxu0 %v149_v2 }
   0x8   :  { %v22_v4 = vld [vmem:[#allocation2] sm:$0xff]  ;;  %v23_v6 = vld [vmem:[#allocation2 + $0x8] sm:$0xff] }
   0x9   :  { %143 = vmatmul.mubr.msk.bf16.vlgmr.msra.gmra.mrb[0].mxu0 %vm47_vm2, %v150_v3 }
  0xdc   :  { %v85_v5 = vpop.f32.mrb[0].mxu0 }
  0xdd   :  { %v92_v7 = vadd.f32 %v85_v5, %v22_v4  ;;  %v144_v8 = vpop.f32.mrb[1].mxu0 }
  0xde   :  { %v88_v9 = vpop.f32.mrb[2].mxu0 }
  0xdf   :  { %95 = vst.msk [vmem:[#allocation2] sm:$0xff] %vm19_vm0, %v92_v7  ;;  %v93_v10 = vadd.f32 %v88_v9, %v23_v6  ;;  %v145_v11 = vpop.f32.mrb[3].mxu0 }
  0xe1   :  { %96 = vst.msk [vmem:[#allocation2 + $0x8] sm:$0xff] %vm19_vm0, %v93_v10 }
  0xe6   :  { %v100_v13 = vld [vmem:[#allocation2] sm:$0xff] }
  0xe7   :  { %v109_v14 = vadd.f32 %v130_v12, %v100_v13 }
  0xe8   :  { %v101_v15 = vld [vmem:[#allocation2 + $0x8] sm:$0xff] }
  0xe9   :  { %v133_v16 = vpack.c.bf16 %v109_v14, %v109_v14  ;;  %v110_v17 = vadd.f32 %v130_v12, %v101_v15 }
  0xeb   :  { %120 = vst.msk [vmem:[%s198_s3] sm:$0xf] %vm119_vm3, %v133_v16  ;;  %v134_v18 = vpack.c.bf16 %v110_v17, %v110_v17 }
  0xed   :  { %121 = vst.msk [vmem:[%s198_s3 + $0x4] sm:$0xf] %vm119_vm3, %v134_v18 }

// kernel: bert_base_forward.19
= control target key start
LH: loop header
LB: loop body
LE: loop exit
PB: predicated region body
PF: predicated region fallthrough
CT: control target
= control target key end

     0   :  { %s666_s9 = smov 0   ;;  %s709_s0 = inlined_call_operand.vmem [shape: bf16[2,8,96], index: 0, kind: input, shape index: {}]   ;;  %s710_s1 = inlined_call_operand.vmem [shape: f32[2,1,8], index: 1, kind: input, shape index: {}]   ;;  %s711_s2 = inlined_call_operand.vmem [shape: bf16[2,8,32], index: 2, kind: output, shape index: {}]  }
   0x1 LB: > { %s567_s10 = sadd.s32 4294967295, %s641_s9   ;;  %p571_p0 = scmp.ge.s32.totalorder %s641_s9, 1  ;;  %s641_s9 = sphi %s666_s9, %s12_s9  }
   0x2   : > { %p119_p1 = scmp.lt.s32.totalorder %s641_s9, 3 }
   0x4   : > { %p120_p2 = pnand %p571_p0, %p119_p1 }
   0x5   : > { %p142_p3 = scmp.lt.s32.totalorder (!%p120_p2), %s567_s10, 1  ;;  %v643_v0 = vmov (!%p120_p2), 0.0   ;;  %vm644_vm0 = vmmov (!%p120_p2), 0   ;;  %s645_s15 = smov (!%p120_p2), 96   ;;  %vm159_vm1 = vcmask (!%p120_p2), 130048   ;;  %vm242_vm2 = vcmask (!%p120_p2), 64512  }
   0x6   : > { %123 = sbr.rel (%p120_p2) target bundleno = 1532 (0x5fc), region = 28  ;;  %591 = vmatprep.subr.mxu0 (!%p120_p2), %v643_v0  ;;  %593 = vmatprep.mubr.msk.f32.mxu0 (!%p120_p2), %vm644_vm0, %v643_v0  ;;  %s646_s16 = smov (!%p120_p2), 64   ;;  %vm503_vm3 = vcmask (!%p120_p2), 257024  }
   0x7   : > { %596 = vmatprep.subr.mxu1 (!%p120_p2), %v643_v0  ;;  %598 = vmatprep.mubr.msk.f32.mxu1 (!%p120_p2), %vm644_vm0, %v643_v0  ;;  %s647_s17 = smov (!%p120_p2), 80   ;;  %s648_s21 = smov (!%p120_p2), 112  }
   0x8   : > { %s649_s22 = smov (!%p120_p2), 48   ;;  %s650_s23 = smov (!%p120_p2), 16  }
   0xd   : > { %s713_s10 = smov (!%p142_p3, %s567_s10), 1 }
   0xe   : > { %s572_s11 = sshll.u32 %s713_s10, 2  ;;  %s148_s20 = scalar_lea.vmem %s710_s1, %s713_s10 }
   0xf   : > { %s145_s14 = scalar_lea.vmem %s709_s0, %s572_s11  ;;  %v576_v5 = vld [vmem:[%s148_s20] ss:$0 sm:$0xff]  ;;  %s152_s26 = scalar_lea.vmem %s711_s2, %s572_s11 }
  0x10   : > { %v153_v1 = vld [vmem:[%s145_s14] sm:$0xf] }
  0x11   : > { %v154_v2 = vunpack.c.l.bf16 %v153_v1 }
  0x13   : > { %157 = vrot.lane.b32.xlu0 %v154_v2, %s645_s15  ;;  %254 = vrot.lane.b32.xlu1 %v154_v2, %s646_s16 }
  0x17   : > { %332 = vrot.lane.b32.xlu1 %v154_v2, %s647_s17 }
  0x85   : > { %v158_v3 = vpop.permute.xlu0 %157  ;;  %v255_v10 = vpop.permute.xlu1 %254 }
  0x86   : > { %592 = vmatpush3.xpose.msk.msra.mxu0 %vm159_vm1, %v158_v3  ;;  %597 = vmatpush3.msra.mxu1 %v255_v10 }
  0x87   : > { %606 = vmatprep.subr.mxu0 %v643_v0  ;;  %601 = vmatprep.subr.mxu1 %v643_v0 }
  0x89   : > { %594 = vmatmul.mubr.msk.f32.vlgmr.msra.gmra.mrb[0].mxu0 %vm159_vm1, %v154_v2  ;;  %v333_v16 = vpop.permute.xlu1 %332 }
  0x8a   : > { %608 = vmatprep.mubr.msk.f32.mxu0 %vm644_vm0, %v643_v0 }
 0x15c   : > { %v230_v4 = vpop.f32.mrb[0].mxu0 }
 0x15d   : > { %v234_v6 = vmul.f32 0.25, %v230_v4  ;;  %v595_v7 = vpop.f32.mrb[1].mxu0 }
 0x15f   : > { %v241_v8 = vadd.f32 %v576_v5, %v234_v6 }
 0x161   : > { %v243_v9 = vsel %vm242_vm2, %v241_v8, -inf }
 0x162   : > { %244 = vmax.xlane.f32.xlu0 %v243_v9 }
 0x1ef   : > { %v245_v11 = vpop.xlane.xlu0 %244 }
 0x1f0   : > { %v246_v12 = vsub.f32 %v241_v8, %v245_v11 }
 0x1f2   : > { %v247_v13 = vmul.f32 1.442695, %v246_v12 }
 0x1f4   : > { %627 = vpow2.f32 %v247_v13 }
 0x1fe   : > { %v628_v14 = vpop.eup %627 }
 0x1ff   : > { %v249_v15 = vsel %vm242_vm2, %v628_v14, 0.0 }
 0x200   : > { %250 = vadd.xlane.f32.xlu1 %v249_v15 }
 0x211   : > { %330 = vrot.lane.b32.xlu1 %v154_v2, %s648_s21 }
 0x28d   : > { %v251_v17 = vpop.xlane.xlu1 %250 }
 0x28e   : > { %629 = vrcp.f32 %v251_v17 }
 0x291   : > { %v331_v20 = vpop.permute.xlu1 %330 }
 0x298   : > { %v630_v18 = vpop.eup %629 }
 0x299   : > { %v253_v19 = vmul.f32 %v630_v18, %v628_v14 }
 0x29b   : > { %599 = vmatmul.mubr.msk.f32.vlgmr.msra.gmra.mrb[0].mxu1 %vm242_vm2, %v253_v19 }
 0x29c   : > { %602 = vmatpush3.xpose.msk.msra.mxu1 %vm159_vm1, %v333_v16  ;;  %603 = vmatprep.mubr.msk.f32.mxu1 %vm644_vm0, %v643_v0 }
 0x29f   : > { %604 = vmatmul.mubr.msk.f32.vlgmr.msra.gmra.mrb[2].mxu1 %vm159_vm1, %v331_v20 }
 0x36e   : > { %v326_v21 = vpop.f32.mrb[0].mxu1 }
 0x36f   : > { %v600_v22 = vpop.f32.mrb[1].mxu1 }
 0x372   : > { %v404_v23 = vpop.f32.mrb[2].mxu1 }
 0x373   : > { %v408_v24 = vmul.f32 0.25, %v404_v23  ;;  %v605_v25 = vpop.f32.mrb[3].mxu1 }
 0x375   : > { %v409_v26 = vadd.f32 %v576_v5, %v408_v24 }
 0x377   : > { %v410_v27 = vsel %vm242_vm2, %v409_v26, -inf }
 0x378   : > { %411 = vmax.xlane.f32.xlu1 %v410_v27 }
 0x405   : > { %v412_v28 = vpop.xlane.xlu1 %411 }
 0x406   : > { %v413_v29 = vsub.f32 %v409_v26, %v412_v28 }
 0x408   : > { %v414_v30 = vmul.f32 1.442695, %v413_v29 }
 0x40a   : > { %631 = vpow2.f32 %v414_v30 }
 0x414   : > { %v632_v31 = vpop.eup %631 }
 0x415   : > { %v416_v32 = vsel %vm242_vm2, %v632_v31, 0.0 }
 0x416   : > { %417 = vadd.xlane.f32.xlu0 %v416_v32 }
 0x42c   : > { %421 = vrot.lane.b32.xlu0 %v154_v2, %s649_s22 }
 0x4a3   : > { %v418_v33 = vpop.xlane.xlu0 %417 }
 0x4a4   : > { %633 = vrcp.f32 %v418_v33 }
 0x4a7   : > { %v422_v34 = vpop.permute.xlu0 %421 }
 0x4a8   : > { %607 = vmatpush3.msra.mxu0 %v422_v34 }
 0x4ae   : > { %v634_v35 = vpop.eup %633 }
 0x4af   : > { %v420_v36 = vmul.f32 %v634_v35, %v632_v31 }
 0x4b1   : > { %609 = vmatmul.mubr.msk.f32.vlgmr.msra.gmra.mrb[2].mxu0 %vm242_vm2, %v420_v36 }
 0x584   : > { %v493_v37 = vpop.f32.mrb[2].mxu0 }
 0x585   : > { %498 = vrot.lane.b32.xlu0 %v493_v37, %s650_s23  ;;  %v610_v38 = vpop.f32.mrb[3].mxu0 }
 0x5f7   : > { %v499_v39 = vpop.permute.xlu0 %498 }
 0x5f8   : > { %v501_v40 = vsel %vm159_vm1, %v326_v21, %v499_v39 }
 0x5f9   : > { %v502_v41 = vpack.c.bf16 %v501_v40, %v501_v40 }
 0x5fb   : > { %504 = vst.msk [vmem:[%s152_s26] sm:$0xf] %vm503_vm3, %v502_v41 }
 0x5fc PF: > { %s12_s9 = sadd.s32 1, %s641_s9  }
 0x5fd   : > { %p9_p4 = scmp.ge.s32.totalorder %s12_s9, 4  }
 0x5ff   :  { %11 = sbr.rel (!%p9_p4) target bundleno = 1 (0x1), region = 61 }

// kernel: bert_base_forward.21
= control target key start
LH: loop header
LB: loop body
LE: loop exit
PB: predicated region body
PF: predicated region fallthrough
CT: control target
= control target key end

     0   :  { %vm27_vm0 = vcmask 261120   ;;  %vm81_vm1 = vcmask 257024   ;;  %s153_s0 = inlined_call_operand.vmem [shape: bf16[16,32], index: 0, kind: input, shape index: {}]   ;;  %s154_s1 = inlined_call_operand.vmem [shape: bf16[16,32], index: 1, kind: input, shape index: {}]   ;;  %s155_s2 = inlined_call_operand.vmem [shape: f32[1,32], index: 2, kind: input, shape index: {}]   ;;  %s156_s3 = inlined_call_operand.vmem [shape: f32[1,32], index: 3, kind: input, shape index: {}]   ;;  %s157_s4 = inlined_call_operand.vmem [shape: bf16[16,32], index: 4, kind: output, shape index: {}]  }
   0x1   :  { %v95_v0 = vld [vmem:[%s153_s0] sm:$0xff]  }
   0x2   :  { %v99_v1 = vld [vmem:[%s154_s1] sm:$0xff]   ;;  %v96_v2 = vunpack.c.l.bf16 %v95_v0  ;;  %v97_v4 = vunpack.c.h.bf16 %v95_v0 }
   0x3   :  { %v100_v3 = vunpack.c.l.bf16 %v99_v1  ;;  %v101_v5 = vunpack.c.h.bf16 %v99_v1  ;;  %v88_v27 = vld [vmem:[%s155_s2] ss:$0 sm:$0xff] }
   0x4   :  { %v89_v29 = vld [vmem:[%s156_s3] ss:$0 sm:$0xff] }
   0x5   :  { %v25_v6 = vadd.f32 %v100_v3, %v96_v2  ;;  %v26_v7 = vadd.f32 %v101_v5, %v97_v4 }
   0x7   :  { %v28_v8 = vsel %vm27_vm0, %v25_v6, 0.0  ;;  %v31_v9 = vsel %vm27_vm0, %v26_v7, 0.0 }
   0x8   :  { %29 = vadd.xlane.f32.xlu0 %v28_v8 }
   0xc   :  { %32 = vadd.xlane.f32.xlu0 %v31_v9 }
  0x95   :  { %v30_v10 = vpop.xlane.xlu0 %29 }
  0x96   :  { %v35_v11 = vmul.f32 0.03125, %v30_v10 }
  0x98   :  { %v37_v12 = vsub.f32 %v25_v6, %v35_v11 }
  0x99   :  { %v33_v13 = vpop.xlane.xlu0 %32 }
  0x9a   :  { %v36_v14 = vmul.f32 0.03125, %v33_v13  ;;  %v39_v15 = vmul.f32 %v37_v12, %v37_v12 }
  0x9c   :  { %v38_v16 = vsub.f32 %v26_v7, %v36_v14  ;;  %v41_v17 = vsel %vm27_vm0, %v39_v15, 0.0 }
  0x9d   :  { %42 = vadd.xlane.f32.xlu1 %v41_v17 }
  0x9e   :  { %v40_v18 = vmul.f32 %v38_v16, %v38_v16 }
  0xa0   :  { %v44_v19 = vsel %vm27_vm0, %v40_v18, 0.0 }
  0xa1   :  { %45 = vadd.xlane.f32.xlu1 %v44_v19 }
 0x12a   :  { %v43_v20 = vpop.xlane.xlu1 %42 }
 0x12b   :  { %v47_v21 = vmul.f32 0.03125, %v43_v20 }
 0x12d   :  { %v49_v22 = vadd.f32 1e-12, %v47_v21 }
 0x12e   :  { %v46_v23 = vpop.xlane.xlu1 %45 }
 0x12f   :  { %102 = vrsqrt.f32 %v49_v22  ;;  %v48_v24 = vmul.f32 0.03125, %v46_v23 }
 0x131   :  { %v50_v25 = vadd.f32 1e-12, %v48_v24 }
 0x133   :  { %104 = vrsqrt.f32 %v50_v25 }
 0x139   :  { %v103_v26 = vpop.eup %102 }
 0x13a   :  { %v53_v28 = vmul.f32 %v103_v26, %v37_v12 }
 0x13c   :  { %v62_v30 = vmul.f32 %v88_v27, %v53_v28 }
 0x13d   :  { %v105_v31 = vpop.eup %104 }
 0x13e   :  { %v71_v32 = vadd.f32 %v89_v29, %v62_v30  ;;  %v54_v33 = vmul.f32 %v105_v31, %v38_v16 }
 0x140   :  { %v92_v34 = vpack.c.bf16 %v71_v32, %v71_v32  ;;  %v63_v35 = vmul.f32 %v88_v27, %v54_v33 }
 0x142   :  { %82 = vst.msk [vmem:[%s157_s4] sm:$0xf] %vm81_vm1, %v92_v34  ;;  %v72_v36 = vadd.f32 %v89_v29, %v63_v35 }
 0x144   :  { %v93_v37 = vpack.c.bf16 %v72_v36, %v72_v36 }
 0x146   :  { %83 = vst.msk [vmem:[%s157_s4 + $0x4] sm:$0xf] %vm81_vm1, %v93_v37 }

// kernel: bert_base_forward.22
= control target key start
LH: loop header
LB: loop body
LE: loop exit
PB: predicated region body
PF: predicated region fallthrough
CT: control target
= control target key end

     0   :  { %vm19_vm0 = vcmask 523264   ;;  %v173_v0 = vmov 0.0   ;;  %vm174_vm1 = vmmov 0   ;;  %vm47_vm2 = vcmask 261120   ;;  %s217_s1 = inlined_call_operand.vmem [shape: bf16[32,64], index: 1, kind: input, shape index: {}]   ;;  %s218_s0 = inlined_call_operand.vmem [shape: bf16[16,32], index: 0, kind: input, shape index: {}]   ;;  %s219_s2 = inlined_call_operand.vmem [shape: f32[1,64], index: 2, kind: input, shape index: {}]   ;;  %s220_s3 = inlined_call_operand.vmem [shape: bf16[16,64], index: 3, kind: output, shape index: {}]  }
   0x1   :  { %156 = vmatprep.subr.bf16.mxu0 %v173_v0  ;;  %v166_v1 = vld [vmem:[%s217_s1] sm:$0xff]   ;;  %160 = vmatprep.mubr.msk.bf16.mxu0 %vm174_vm1, %v173_v0  ;;  %20 = vst.msk [vmem:[#allocation2] sm:$0xff] %vm19_vm0, %v173_v0  ;;  %21 = vst.msk [vmem:[#allocation2 + $0x8] sm:$0xff] %vm19_vm0, %v173_v0  ;;  %v167_v2 = vld [vmem:[%s217_s1 + $0x8] sm:$0xff]   ;;  %vm137_vm3 = vcmask 519168  }
   0x2   :  { %157 = vmatpush3.bf16.msra.mxu0 %v166_v1  ;;  %v168_v3 = vld [vmem:[%s218_s0] sm:$0xff]  }
   0x3   :  { %158 = vmatprep.subr.bf16.mxu0 %v173_v0  ;;  %v148_v12 = vld [vmem:[%s219_s2] ss:$0 sm:$0xff] }
   0x6   :  { %159 = vmatpush3.bf16.msra.mxu0 %v167_v2 }
   0x8   :  { %v22_v4 = vld [vmem:[#allocation2] sm:$0xff]  ;;  %v23_v6 = vld [vmem:[#allocation2 + $0x8] sm:$0xff] }
   0x9   :  { %161 = vmatmul.mubr.msk.bf16.vlgmr.msra.gmra.mrb[0].mxu0 %vm47_vm2, %v168_v3 }
  0xdc   :  { %v85_v5 = vpop.f32.mrb[0].mxu0 }
  0xdd   :  { %v92_v7 = vadd.f32 %v85_v5, %v22_v4  ;;  %v162_v8 = vpop.f32.mrb[1].mxu0 }
  0xde   :  { %v88_v9 = vpop.f32.mrb[2].mxu0 }
  0xdf   :  { %95 = vst.msk [vmem:[#allocation2] sm:$0xff] %vm19_vm0, %v92_v7  ;;  %v93_v10 = vadd.f32 %v88_v9, %v23_v6  ;;  %v163_v11 = vpop.f32.mrb[3].mxu0 }
  0xe1   :  { %96 = vst.msk [vmem:[#allocation2 + $0x8] sm:$0xff] %vm19_vm0, %v93_v10 }
  0xe6   :  { %v100_v13 = vld [vmem:[#allocation2] sm:$0xff] }
  0xe7   :  { %v109_v14 = vadd.f32 %v148_v12, %v100_v13 }
  0xe8   :  { %v101_v15 = vld [vmem:[#allocation2 + $0x8] sm:$0xff] }
  0xe9   :  { %v111_v16 = vmul.f32 %v109_v14, %v109_v14  ;;  %v110_v17 = vadd.f32 %v148_v12, %v101_v15 }
  0xeb   :  { %v113_v18 = vmul.f32 %v111_v16, %v109_v14  ;;  %v112_v19 = vmul.f32 %v110_v17, %v110_v17 }
  0xed   :  { %v115_v20 = vmul.f32 0.044715, %v113_v18  ;;  %v114_v21 = vmul.f32 %v112_v19, %v110_v17 }
  0xef   :  { %v117_v22 = vadd.f32 %v115_v20, %v109_v14  ;;  %v116_v23 = vmul.f32 0.044715, %v114_v21 }
  0xf1   :  { %v119_v24 = vmul.f32 0.7978846, %v117_v22  ;;  %v118_v25 = vadd.f32 %v116_v23, %v110_v17 }
  0xf3   :  { %169 = vtanh.f32 %v119_v24  ;;  %v120_v26 = vmul.f32 0.7978846, %v118_v25 }
  0xf5   :  { %171 = vtanh.f32 %v120_v26 }
  0xfd   :  { %v170_v27 = vpop.eup %169 }
  0xfe   :  { %v123_v28 = vadd.f32 1.0, %v170_v27 }
  0xff   :  { %v172_v29 = vpop.eup %171 }
 0x100   :  { %v125_v30 = vmul.f32 0.5, %v123_v28  ;;  %v124_v31 = vadd.f32 1.0, %v172_v29 }
 0x102   :  { %v127_v32 = vmul.f32 %v125_v30, %v109_v14  ;;  %v126_v33 = vmul.f32 0.5, %v124_v31 }
 0x104   :  { %v151_v34 = vpack.c.bf16 %v127_v32, %v127_v32  ;;  %v128_v35 = vmul.f32 %v126_v33, %v110_v17 }
 0x106   :  { %138 = vst.msk [vmem:[%s220_s3] sm:$0xf] %vm137_vm3, %v151_v34  ;;  %v152_v36 = vpack.c.bf16 %v128_v35, %v128_v35 }
 0x108   :  { %139 = vst.msk [vmem:[%s220_s3 + $0x4] sm:$0xf] %vm137_vm3, %v152_v36 }

// kernel: bert_base_forward.23
= control target key start
LH: loop header
LB: loop body
LE: loop exit
PB: predicated region body
PF: predicated region fallthrough
CT: control target
= control target key end

     0   :  { %vm19_vm0 = vcmask 261120   ;;  %v177_v0 = vmov 0.0   ;;  %vm178_vm1 = vmmov 0   ;;  %vm63_vm2 = vcmask 523264   ;;  %s227_s1 = inlined_call_operand.vmem [shape: bf16[64,32], index: 1, kind: input, shape index: {}]   ;;  %s228_s0 = inlined_call_operand.vmem [shape: bf16[16,64], index: 0, kind: input, shape index: {}]   ;;  %s229_s2 = inlined_call_operand.vmem [shape: f32[1,32], index: 2, kind: input, shape index: {}]   ;;  %s230_s3 = inlined_call_operand.vmem [shape: bf16[16,32], index: 3, kind: output, shape index: {}]  }
   0x1   :  { %158 = vmatprep.subr.bf16.mxu0 %v177_v0  ;;  %v172_v1 = vld [vmem:[%s227_s1] sm:$0xff]   ;;  %166 = vmatprep.mubr.msk.bf16.mxu0 %vm178_vm1, %v177_v0  ;;  %20 = vst.msk [vmem:[#allocation2] sm:$0xff] %vm19_vm0, %v177_v0  ;;  %21 = vst.msk [vmem:[#allocation2 + $0x8] sm:$0xff] %vm19_vm0, %v177_v0  ;;  %v173_v2 = vld [vmem:[%s227_s1 + $0x8] sm:$0xff]   ;;  %vm135_vm3 = vcmask 257024  }
   0x2   :  { %159 = vmatpush3.bf16.msra.mxu0 %v172_v1  ;;  %v174_v3 = vld [vmem:[%s227_s1 + $0x10] sm:$0xff]   ;;  %v175_v4 = vld [vmem:[%s227_s1 + $0x18] sm:$0xff]   ;;  %v176_v5 = vld [vmem:[%s228_s0] sm:$0xff]  }
   0x3   :  { %160 = vmatprep.subr.bf16.mxu0 %v177_v0  ;;  %v148_v14 = vld [vmem:[%s229_s2] ss:$0 sm:$0xff] }
   0x6   :  { %161 = vmatpush3.bf16.msra.mxu0 %v173_v2 }
   0x7   :  { %162 = vmatprep.subr.bf16.mxu0 %v177_v0 }
   0x8   :  { %v22_v6 = vld [vmem:[#allocation2] sm:$0xff]  ;;  %v23_v8 = vld [vmem:[#allocation2 + $0x8] sm:$0xff] }
   0xa   :  { %163 = vmatpush3.bf16.msra.mxu0 %v174_v3 }
   0xb   :  { %164 = vmatprep.subr.bf16.mxu0 %v177_v0 }
   0xe   :  { %165 = vmatpush3.bf16.msra.mxu0 %v175_v4 }
  0x11   :  { %167 = vmatmul.mubr.msk.bf16.vlgmr.msra.gmra.mrb[0].mxu0 %vm63_vm2, %v176_v5 }
  0xe4   :  { %v101_v7 = vpop.f32.mrb[0].mxu0 }
  0xe5   :  { %v108_v9 = vadd.f32 %v101_v7, %v22_v6  ;;  %v168_v10 = vpop.f32.mrb[1].mxu0 }
  0xe6   :  { %v104_v11 = vpop.f32.mrb[2].mxu0 }
  0xe7   :  { %111 = vst.msk [vmem:[#allocation2] sm:$0xff] %vm19_vm0, %v108_v9  ;;  %v109_v12 = vadd.f32 %v104_v11, %v23_v8  ;;  %v169_v13 = vpop.f32.mrb[3].mxu0 }
  0xe9   :  { %112 = vst.msk [vmem:[#allocation2 + $0x8] sm:$0xff] %vm19_vm0, %v109_v12 }
  0xee   :  { %v116_v15 = vld [vmem:[#allocation2] sm:$0xff] }
  0xef   :  { %v125_v16 = vadd.f32 %v148_v14, %v116_v15 }
  0xf0   :  { %v117_v17 = vld [vmem:[#allocation2 + $0x8] sm:$0xff] }
  0xf1   :  { %v151_v18 = vpack.c.bf16 %v125_v16, %v125_v16  ;;  %v126_v19 = vadd.f32 %v148_v14, %v117_v17 }
  0xf3   :  { %136 = vst.msk [vmem:[%s230_s3] sm:$0xf] %vm135_vm3, %v151_v18  ;;  %v152_v20 = vpack.c.bf16 %v126_v19, %v126_v19 }
  0xf5   :  { %137 = vst.msk [vmem:[%s230_s3 + $0x4] sm:$0xf] %vm135_vm3, %v152_v20 }

// kernel: bert_base_forward.32
= control target key start
LH: loop header
LB: loop body
LE: loop exit
PB: predicated region body
PF: predicated region fallthrough
CT: control target
= control target key end

     0   :  { %vm19_vm0 = vcmask 254976   ;;  %v127_v0 = vmov 0.0   ;;  %vm128_vm1 = vmmov 0   ;;  %vm39_vm2 = vcmask 261120   ;;  %s166_s1 = inlined_call_operand.vmem [shape: bf16[32,32], index: 1, kind: input, shape index: {}]   ;;  %s167_s0 = inlined_call_operand.vmem [shape: bf16[2,32], index: 0, kind: input, shape index: {}]   ;;  %s168_s2 = inlined_call_operand.vmem [shape: f32[1,32], index: 2, kind: input, shape index: {}]   ;;  %s169_s3 = inlined_call_operand.vmem [shape: bf16[2,32], index: 3, kind: output, shape index: {}]  }
   0x1   :  { %20 = vst.msk [vmem:[#allocation2] sm:$0x3] %vm19_vm0, %v127_v0  ;;  %113 = vmatprep.subr.bf16.mxu0 %v127_v0  ;;  %v123_v1 = vld [vmem:[%s166_s1] sm:$0xff]   ;;  %117 = vmatprep.mubr.msk.bf16.mxu0 %vm128_vm1, %v127_v0  ;;  %v124_v2 = vld [vmem:[%s166_s1 + $0x8] sm:$0xff]   ;;  %vm100_vm3 = vcmask 253952  }
   0x2   :  { %114 = vmatpush3.bf16.msra.mxu0 %v123_v1  ;;  %v22_v3 = vld [vmem:[%s167_s0] sm:$0x1] }
   0x3   :  { %115 = vmatprep.subr.bf16.mxu0 %v127_v0  ;;  %v109_v10 = vld [vmem:[%s168_s2] ss:$0 sm:$0xff] }
   0x6   :  { %116 = vmatpush3.bf16.msra.mxu0 %v124_v2 }
   0x8   :  { %v21_v4 = vld [vmem:[#allocation2] sm:$0x3] }
   0x9   :  { %118 = vmatmul.mubr.msk.bf16.vlgmr.msra.gmra.mrb[0].mxu0 %vm39_vm2, %v22_v3 }
  0xdc   :  { %v77_v5 = vpop.f32.mrb[0].mxu0 }
  0xdd   :  { %v83_v6 = vadd.f32 %v77_v5, %v21_v4  ;;  %v119_v7 = vpop.f32.mrb[1].mxu0 }
  0xde   :  { %v80_v8 = vpop.f32.mrb[2].mxu0 }
  0xdf   :  { %85 = vst.msk [vmem:[#allocation2] sm:$0x3] %vm19_vm0, %v83_v6  ;;  %v120_v9 = vpop.f32.mrb[3].mxu0 }
  0xe6   :  { %v89_v11 = vld [vmem:[#allocation2] sm:$0x3] }
  0xe7   :  { %v97_v12 = vadd.f32 %v109_v10, %v89_v11 }
  0xe9   :  { %125 = vtanh.f32 %v97_v12 }
  0xf3   :  { %v126_v13 = vpop.eup %125 }
  0xf4   :  { %v99_v14 = vpack.c.bf16 %v126_v13, %v126_v13 }
  0xf6   :  { %101 = vst.msk [vmem:[%s169_s3] sm:$0x1] %vm100_vm3, %v99_v14 }

// kernel: bert_base_forward.33
= control target key start
LH: loop header
LB: loop body
LE: loop exit
PB: predicated region body
PF: predicated region fallthrough
CT: control target
= control target key end

     0   :  { %vm19_vm0 = vcmask 123904   ;;  %v133_v0 = vmov 0.0   ;;  %vm134_vm1 = vmmov 0   ;;  %vm39_vm2 = vcmask 261120   ;;  %s173_s1 = inlined_call_operand.vmem [shape: bf16[32,16], index: 1, kind: input, shape index: {}]   ;;  %s174_s0 = inlined_call_operand.vmem [shape: bf16[2,32], index: 0, kind: input, shape index: {}]   ;;  %s175_s2 = inlined_call_operand.vmem [shape: f32[1,16], index: 2, kind: input, shape index: {}]   ;;  %s176_s3 = inlined_call_operand.vmem [shape: f32[2,16], index: 3, kind: output, shape index: {}]  }
   0x1   :  { %20 = vst.msk [vmem:[#allocation2] sm:$0x3] %vm19_vm0, %v133_v0  ;;  %117 = vmatprep.subr.bf16.mxu0 %v133_v0  ;;  %v127_v1 = vld [vmem:[%s173_s1] sm:$0xff]   ;;  %121 = vmatprep.mubr.msk.bf16.mxu0 %vm134_vm1, %v133_v0  ;;  %v128_v2 = vld [vmem:[%s173_s1 + $0x8] sm:$0xff]  }
   0x2   :  { %118 = vmatpush3.bf16.msra.mxu0 %v127_v1  ;;  %v22_v3 = vld [vmem:[%s174_s0] sm:$0x1] }
   0x3   :  { %119 = vmatprep.subr.bf16.mxu0 %v133_v0  ;;  %v112_v10 = vld [vmem:[%s175_s2] ss:$0 sm:$0xff] }
   0x6   :  { %120 = vmatpush3.bf16.msra.mxu0 %v128_v2 }
   0x8   :  { %v21_v4 = vld [vmem:[#allocation2] sm:$0x3] }
   0x9   :  { %122 = vmatmul.mubr.msk.bf16.vlgmr.msra.gmra.mrb[0].mxu0 %vm39_vm2, %v22_v3 }
  0xdc   :  { %v77_v5 = vpop.f32.mrb[0].mxu0 }
  0xdd   :  { %v83_v6 = vadd.f32 %v77_v5, %v21_v4  ;;  %v123_v7 = vpop.f32.mrb[1].mxu0 }
  0xde   :  { %v80_v8 = vpop.f32.mrb[2].mxu0 }
  0xdf   :  { %85 = vst.msk [vmem:[#allocation2] sm:$0x3] %vm19_vm0, %v83_v6  ;;  %v124_v9 = vpop.f32.mrb[3].mxu0 }
  0xe6   :  { %v89_v11 = vld [vmem:[#allocation2] sm:$0x3] }
  0xe7   :  { %v97_v12 = vadd.f32 %v112_v10, %v89_v11 }
  0xe9   :  { %v113_v13 = vmul.f32 -1.442695, %v97_v12 }
  0xeb   :  { %129 = vpow2.f32 %v113_v13 }
  0xf5   :  { %v130_v14 = vpop.eup %129 }
  0xf6   :  { %v101_v15 = vadd.f32 1.0, %v130_v14 }
  0xf8   :  { %131 = vrcp.f32 %v101_v15 }
 0x102   :  { %v132_v16 = vpop.eup %131 }
 0x103   :  { %104 = vst.msk [vmem:[%s176_s3] sm:$0x3] %vm19_vm0, %v132_v16 }

</bundles_post_ra>
